<compile_context>
chip_gen: v6e
topology: v6e:2x2x1
jax: 0.10.0
libtpu: 0.0.40
codegen_flags: <defaults>
</compile_context>

<pallas_src>
import functools
import random as pyrandom

import jax
import jax.numpy as jnp
from jax import lax
from jax.experimental import pallas as pl
from jax.experimental.pallas import tpu as pltpu

_HALO = 3  # (Kmax - 1) // 2 for the largest kernel size (7)


def _rup(x, m=8):
    return ((x + m - 1) // m) * m


# ----------------------------------------------------------------------------
# Fused whole-network Pallas kernel
# ----------------------------------------------------------------------------
def _fused_kernel(x_ref, *refs, metas, F, NB, L, Lp, BB):
    n = len(metas)
    w_refs = refs[:n]
    s_refs = refs[n:2 * n]
    dec_ref = refs[2 * n]
    enc_ref = refs[2 * n + 1]
    in_slab = refs[2 * n + 2]          # (Fp, N) VMEM scratch: haloed input slab
    stack = refs[2 * n + 3]            # (max_rows, N) VMEM scratch: im2col stack

    P = _HALO
    N = BB * Lp

    # Valid-lane (non-halo) mask -- computed ONCE per grid step (hoisted).
    pos = lax.broadcasted_iota(jnp.int32, (1, N), 1) % Lp
    valid = (pos >= P) & (pos < P + L)                      # (1, N) bool

    # ---- pack: (BB, F, L) input block -> zero-haloed lane-dense slab (Fp, N)
    in_slab[...] = jnp.zeros_like(in_slab)                  # halos + padded rows
    for b in range(BB):                                     # static unroll
        o = b * Lp + P
        in_slab[0:F, o:o + L] = x_ref[b]

    h = in_slab[...]
    for i, (K, cin, relu) in enumerate(metas):
        p = (K - 1) // 2
        rows = K * cin
        # im2col into the reusable sublane-aligned scratch; each tap's shift is
        # folded into the store's lane offsets (halo zeros supply the conv
        # padding; the <=3 uncovered end lanes are zeroed explicitly so no
        # uninitialized data can reach the halo columns).
        for k in range(K):
            s = k - p
            r0, r1 = k * cin, (k + 1) * cin
            if s == 0:
                stack[r0:r1, :] = h
            elif s > 0:
                stack[r0:r1, 0:N - s] = h[:, s:N]
                stack[r0:r1, N - s:N] = jnp.zeros((cin, s), jnp.float32)
            else:
                m = -s
                stack[r0:r1, m:N] = h[:, 0:N - m]
                stack[r0:r1, 0:m] = jnp.zeros((cin, m), jnp.float32)
        y = jnp.dot(w_refs[i][...], stack[0:rows, :],
                    preferred_element_type=jnp.float32) + s_refs[i][...]
        if relu:
            y = jnp.maximum(y, 0.0)
        if i < n - 1:
            # re-zero halo lanes once per layer (bias/ReLU/bleed made them nonzero)
            y = jnp.where(valid, y, 0.0)
        h = y
        if i == 2:
            # encoder output; F.dropout(training=False) is identity. Unpack now.
            for b in range(BB):
                o = b * Lp + P
                enc_ref[b] = h[0:NB, o:o + L]

    # ---- unpack decoded output per sample (valid lanes only)
    for b in range(BB):
        o = b * Lp + P
        dec_ref[b] = h[0:F, o:o + L]


# ----------------------------------------------------------------------------
# Generation-aware batch blocking
# ----------------------------------------------------------------------------
def _choose_blocking(B, F, NB, Lp, max_rows, max_c, samples_per_block=None):
    fp = _rup(F)
    # f32 bytes of live VMEM per slab lane: double-buffered in/out blocks,
    # input slab, im2col stack, and a few compiler-managed intermediates.
    bytes_per_lane = 4 * (4 * F + 2 * NB + fp + max_rows + 3 * max_c)

    vmem_cap = 64 << 20            # conservative default: v7x per-core VMEM
    cores = 1
    try:
        info = pltpu.get_tpu_info()
        cap = getattr(info, "vmem_capacity_bytes", None)
        if cap:
            vmem_cap = int(cap)
    except Exception:
        pass
    try:
        kind = jax.devices()[0].device_kind.lower()
        if ("v4" in kind or "v7" in kind
                or ("v5" in kind and "lite" not in kind and "v5e" not in kind)):
            cores = 2              # 2 TensorCores per chip (v4 / v5p / v7x)
    except Exception:
        pass

    if samples_per_block is not None:
        assert B % samples_per_block == 0
        bb = samples_per_block
    else:
        budget = min(vmem_cap // 2, 48 << 20)
        bb_cap = max(1, min(64, budget // (bytes_per_lane * Lp)))  # 64 caps unroll
        divisors = [d for d in range(1, B + 1) if B % d == 0]
        feasible = [d for d in divisors if d <= bb_cap] or [1]
        bb = max(feasible)                         # single-TC: widest lane slab
        if cores >= 2:                             # multi-TC: keep both cores busy
            par = [d for d in feasible if (B // d) >= cores and d * Lp >= 128]
            if par:
                bb = max(par)
    g = B // bb

    footprint = bytes_per_lane * bb * Lp + (2 << 20)      # + weights / headroom
    vmem_limit = int(min(max(2 * footprint, 32 << 20), vmem_cap - (8 << 20)))
    vmem_limit = max(vmem_limit, 16 << 20)
    return bb, g, vmem_limit


# ----------------------------------------------------------------------------
# Host wrapper: no layout passes -- x goes in as (B, F, L), outputs come back
# as (B, F, L) / (B, NB, L) directly.
# ----------------------------------------------------------------------------
def forward(x, model, *, samples_per_block=None):
    """x: (B, F, L) -> (decoded (B, F, L), encoded (B, NB, L))."""
    B, F_, L = x.shape
    NB = model['num_branches']
    layers = model['layers']

    ws = [ly['wf'] for ly in layers]
    ss = [ly['shift'] for ly in layers]
    metas = tuple((ly['K'], ly['cin_pad'], ly['relu']) for ly in layers)

    P = _HALO
    Lp = L + 2 * P
    Fp = _rup(F_)
    max_rows = max(K * c for K, c, _ in metas)
    max_c = max([w.shape[0] for w in ws] + [c for _, c, _ in metas])

    BB, G, vmem_limit = _choose_blocking(B, F_, NB, Lp, max_rows, max_c,
                                         samples_per_block)
    N = BB * Lp

    kernel = functools.partial(_fused_kernel, metas=metas,
                               F=F_, NB=NB, L=L, Lp=Lp, BB=BB)

    in_specs = [pl.BlockSpec((BB, F_, L), lambda g: (g, 0, 0))]
    in_specs += [pl.BlockSpec(w.shape, lambda g: (0, 0)) for w in ws]
    in_specs += [pl.BlockSpec(s.shape, lambda g: (0, 0)) for s in ss]

    out_shape = (jax.ShapeDtypeStruct((B, F_, L), jnp.float32),
                 jax.ShapeDtypeStruct((B, NB, L), jnp.float32))
    out_specs = (pl.BlockSpec((BB, F_, L), lambda g: (g, 0, 0)),
                 pl.BlockSpec((BB, NB, L), lambda g: (g, 0, 0)))

    scratch_shapes = [pltpu.VMEM((Fp, N), jnp.float32),        # haloed input slab
                      pltpu.VMEM((max_rows, N), jnp.float32)]  # reusable im2col stack

    dec, enc = pl.pallas_call(
        kernel,
        out_shape=out_shape,
        grid=(G,),
        in_specs=in_specs,
        out_specs=out_specs,
        scratch_shapes=scratch_shapes,
        compiler_params=pltpu.CompilerParams(
            dimension_semantics=("parallel",),
            vmem_limit_bytes=vmem_limit),
    )(x, *ws, *ss)
    return dec, enc


# ----------------------------------------------------------------------------
# Deterministic parameter construction (mirrors the PyTorch module's shapes)
# ----------------------------------------------------------------------------
def init_model(seed, num_features, latent_features, reception_percent):
    NB = latent_features          # num_branches == latent_features
    F_ = num_features
    eps = 1e-5

    # permutation masks (deterministic version of the module's random.sample init)
    rng = pyrandom.Random(seed)
    per_latent = max(int(reception_percent * F_), 1)
    receive_from = [sorted(rng.sample(range(F_), per_latent)) for _ in range(NB)]
    masks = jnp.array([[1.0 if i in rf else 0.0 for i in range(F_)] for rf in receive_from],
                      dtype=jnp.float32)                                   # (NB, F)

    ks = iter(jax.random.split(jax.random.PRNGKey(seed), 64))

    def nrm(shape, s=0.1):
        return s * jax.random.normal(next(ks), shape, dtype=jnp.float32)

    def bn_params(C):
        return dict(gamma=1.0 + nrm((C,)), beta=nrm((C,)),
                    mean=nrm((C,)), var=1.0 + jnp.abs(nrm((C,))))

    # --- raw PyTorch-layout parameters (used by the pure-JAX reference) ---
    raw = dict(
        masks=masks,
        # encoder grouped Conv1d weights: (Cout, Cin/groups, K)
        w1=nrm((8 * NB, F_, 7)), b1=nrm((8 * NB,)), bn1=bn_params(8 * NB),
        w2=nrm((8 * NB, 8, 5)),  b2=nrm((8 * NB,)), bn2=bn_params(8 * NB),
        w3=nrm((NB, 8, 3)),      b3=nrm((NB,)),     bn3=bn_params(NB),
        # decoder ConvTranspose1d weights: (Cin, Cout, K)
        w4=nrm((NB, 32, 3)), b4=nrm((32,)),
        w5=nrm((32, 32, 5)), b5=nrm((32,)),
        w6=nrm((32, F_, 7)), b6=nrm((F_,)),
    )

    # --- folded, channel-padded dense form for the fused Pallas kernel ---
    def block_diag(w, groups):
        # grouped conv weight (Cout, Cin/groups, K) -> dense (Cout, Cin, K)
        Cout, ipg, K = w.shape
        opg = Cout // groups
        W = jnp.zeros((Cout, ipg * groups, K), jnp.float32)
        for g in range(groups):
            W = W.at[g * opg:(g + 1) * opg, g * ipg:(g + 1) * ipg, :].set(
                w[g * opg:(g + 1) * opg])
        return W

    def t2conv(wT):
        # ConvTranspose1d weight (Cin, Cout, K), stride 1 -> Conv1d weight (Cout, Cin, K)
        return jnp.flip(jnp.transpose(wT, (1, 0, 2)), axis=2)

    def fold(W_oik, bias, bn, relu, cin_pad, cout_pad):
        Cout, Cin, K = W_oik.shape
        if bn is None:
            scale = jnp.ones((Cout,), jnp.float32)
            shift = bias
        else:
            scale = bn['gamma'] / jnp.sqrt(bn['var'] + eps)
            shift = bn['beta'] + (bias - bn['mean']) * scale
        Ws = W_oik * scale[:, None, None]                  # fold BN scale into W
        # zero-pad Cin/Cout to multiples of 8 for aligned sublane offsets
        Wp = jnp.zeros((cout_pad, cin_pad, K), jnp.float32).at[:Cout, :Cin, :].set(Ws)
        # im2col weight layout (Cout_pad, K*Cin_pad): column index = k*Cin_pad + c
        wf = jnp.transpose(Wp, (0, 2, 1)).reshape(cout_pad, K * cin_pad)
        sp = jnp.zeros((cout_pad, 1), jnp.float32).at[:Cout, 0].set(shift)
        return dict(wf=wf, shift=sp, K=K, cin_pad=cin_pad, relu=relu)

    Fp = _rup(F_)
    NBp = _rup(NB)
    C8 = 8 * NB                                            # already a multiple of 8

    # layer 1: input repeat + branch mask folded into a dense (8*NB, F, 7) conv on x
    mask_rep = jnp.repeat(masks, 8, axis=0)                # (8*NB, F)
    layers = [
        fold(raw['w1'] * mask_rep[:, :, None], raw['b1'], raw['bn1'], True,  Fp,  C8),
        fold(block_diag(raw['w2'], NB),        raw['b2'], raw['bn2'], True,  C8,  C8),
        fold(block_diag(raw['w3'], NB),        raw['b3'], raw['bn3'], True,  C8,  NBp),
        # decoder: stride-1 'same' ConvTranspose1d == conv with transposed+flipped kernel
        fold(t2conv(raw['w4']),                raw['b4'], None,       True,  NBp, 32),
        fold(t2conv(raw['w5']),                raw['b5'], None,       True,  32,  32),
        fold(t2conv(raw['w6']),                raw['b6'], None,       False, 32,  Fp),
    ]

    return dict(layers=layers, num_branches=NB, raw=raw)


# ----------------------------------------------------------------------------
# Pure-JAX reference that mirrors the PyTorch module (for verification)
# ----------------------------------------------------------------------------
def _conv_ref(x, w, b, pad, groups=1):
    y = lax.conv_general_dilated(x, w, window_strides=(1,), padding=[(pad, pad)],
                                 dimension_numbers=('NCH', 'OIH', 'NCH'),
                                 feature_group_count=groups)
    return y + b[None, :, None]


def _bn_ref(y, bn, eps=1e-5):
    return ((y - bn['mean'][None, :, None]) / jnp.sqrt(bn['var'][None, :, None] + eps)
            * bn['gamma'][None, :, None] + bn['beta'][None, :, None])


def forward_ref(x, model):
    raw = model['raw']
    NB = model['num_branches']
    h = jnp.tile(x, (1, NB, 1)) * raw['masks'].reshape(1, -1, 1)
    h = jnp.maximum(_bn_ref(_conv_ref(h, raw['w1'], raw['b1'], 3, groups=NB), raw['bn1']), 0.0)
    h = jnp.maximum(_bn_ref(_conv_ref(h, raw['w2'], raw['b2'], 2, groups=NB), raw['bn2']), 0.0)
    h = jnp.maximum(_bn_ref(_conv_ref(h, raw['w3'], raw['b3'], 1, groups=NB), raw['bn3']), 0.0)
    encoded = h
    # F.dropout(p=0.3, training=False) -> identity

    def tconv(z, wT, b, pad):
        w = jnp.flip(jnp.transpose(wT, (1, 0, 2)), axis=2)
        K = w.shape[-1]
        return _conv_ref(z, w, b, K - 1 - pad)

    h = jnp.maximum(tconv(h, raw['w4'], raw['b4'], 1), 0.0)
    h = jnp.maximum(tconv(h, raw['w5'], raw['b5'], 2), 0.0)
    h = tconv(h, raw['w6'], raw['b6'], 3)
    return h, encoded


if __name__ == "__main__":
    num_features, latent_features = 4, 3
    model = init_model(0, num_features, latent_features, reception_percent=0.5)

    # case 1: tiny single-block case
    B, L = 2, 16
    x = jax.random.normal(jax.random.PRNGKey(0), (B, num_features, L), dtype=jnp.float32)
    decoded, encoded = forward(x, model)
    jax.block_until_ready((decoded, encoded))
    assert decoded.shape == (B, num_features, L)
    assert encoded.shape == (B, latent_features, L)
    d_ref, e_ref = forward_ref(x, model)
    assert bool(jnp.allclose(encoded, e_ref, atol=1e-4, rtol=1e-4)), "encoded mismatch"
    assert bool(jnp.allclose(decoded, d_ref, atol=1e-4, rtol=1e-4)), "decoded mismatch"

    # case 2: exercise the multi-block (grid > 1) path explicitly
    B2, L2 = 4, 32
    x2 = jax.random.normal(jax.random.PRNGKey(1), (B2, num_features, L2), dtype=jnp.float32)
    d2, e2 = forward(x2, model, samples_per_block=2)   # -> grid of 2 parallel blocks
    jax.block_until_ready((d2, e2))
    d2_ref, e2_ref = forward_ref(x2, model)
    assert bool(jnp.allclose(e2, e2_ref, atol=1e-4, rtol=1e-4)), "encoded mismatch (multi-block)"
    assert bool(jnp.allclose(d2, d2_ref, atol=1e-4, rtol=1e-4)), "decoded mismatch (multi-block)"

    print("KERNEL_OK")
</pallas_src>

<mosaic_0001>
module attributes {stable_mosaic.version = 11 : i64} {
  func.func @_fused_kernel(%arg0: i32, %arg1: memref<2x4x16xf32, #tpu.memory_space<vmem>>, %arg2: memref<24x56xf32, #tpu.memory_space<vmem>>, %arg3: memref<24x120xf32, #tpu.memory_space<vmem>>, %arg4: memref<8x72xf32, #tpu.memory_space<vmem>>, %arg5: memref<32x24xf32, #tpu.memory_space<vmem>>, %arg6: memref<32x160xf32, #tpu.memory_space<vmem>>, %arg7: memref<8x224xf32, #tpu.memory_space<vmem>>, %arg8: memref<24x1xf32, #tpu.memory_space<vmem>>, %arg9: memref<24x1xf32, #tpu.memory_space<vmem>>, %arg10: memref<8x1xf32, #tpu.memory_space<vmem>>, %arg11: memref<32x1xf32, #tpu.memory_space<vmem>>, %arg12: memref<32x1xf32, #tpu.memory_space<vmem>>, %arg13: memref<8x1xf32, #tpu.memory_space<vmem>>, %arg14: memref<2x4x16xf32, #tpu.memory_space<vmem>>, %arg15: memref<2x3x16xf32, #tpu.memory_space<vmem>>, %arg16: memref<8x44xf32, #tpu.memory_space<vmem>>, %arg17: memref<224x44xf32, #tpu.memory_space<vmem>>) attributes {dimension_semantics = [#tpu.dimension_semantics<parallel>], iteration_bounds = array<i64: 1>, scalar_prefetch = 0 : i64, scratch_operands = 2 : i64, tpu.core_type = #tpu.core_type<tc>, window_params = [{transform_indices = @transform_0, window_bounds = array<i64: 2, 4, 16>}, {pipeline_mode = #tpu.pipeline_mode<synchronous>, transform_indices = @transform_1, window_bounds = array<i64: 24, 56>}, {pipeline_mode = #tpu.pipeline_mode<synchronous>, transform_indices = @transform_2, window_bounds = array<i64: 24, 120>}, {pipeline_mode = #tpu.pipeline_mode<synchronous>, transform_indices = @transform_3, window_bounds = array<i64: 8, 72>}, {pipeline_mode = #tpu.pipeline_mode<synchronous>, transform_indices = @transform_4, window_bounds = array<i64: 32, 24>}, {pipeline_mode = #tpu.pipeline_mode<synchronous>, transform_indices = @transform_5, window_bounds = array<i64: 32, 160>}, {pipeline_mode = #tpu.pipeline_mode<synchronous>, transform_indices = @transform_6, window_bounds = array<i64: 8, 224>}, {pipeline_mode = #tpu.pipeline_mode<synchronous>, transform_indices = @transform_7, window_bounds = array<i64: 24, 1>}, {pipeline_mode = #tpu.pipeline_mode<synchronous>, transform_indices = @transform_8, window_bounds = array<i64: 24, 1>}, {pipeline_mode = #tpu.pipeline_mode<synchronous>, transform_indices = @transform_9, window_bounds = array<i64: 8, 1>}, {pipeline_mode = #tpu.pipeline_mode<synchronous>, transform_indices = @transform_10, window_bounds = array<i64: 32, 1>}, {pipeline_mode = #tpu.pipeline_mode<synchronous>, transform_indices = @transform_11, window_bounds = array<i64: 32, 1>}, {pipeline_mode = #tpu.pipeline_mode<synchronous>, transform_indices = @transform_12, window_bounds = array<i64: 8, 1>}, {transform_indices = @transform_13, window_bounds = array<i64: 2, 4, 16>}, {transform_indices = @transform_14, window_bounds = array<i64: 2, 3, 16>}]} {
    %0 = tpu.iota {dimensions = array<i32: 1>} : vector<1x44xi32>
    %c22_i32 = arith.constant 22 : i32
    %c0_i32 = arith.constant 0 : i32
    %1 = arith.cmpi eq, %c22_i32, %c0_i32 : i32
    %c1_i32 = arith.constant 1 : i32
    %2 = arith.select %1, %c1_i32, %c22_i32 : i32
    %3 = vector.broadcast %2 : i32 to vector<1x44xi32>
    %4 = arith.remsi %0, %3 : vector<1x44xi32>
    %c0_i32_0 = arith.constant 0 : i32
    %5 = vector.broadcast %c0_i32_0 : i32 to vector<1x44xi32>
    %6 = arith.cmpi ne, %4, %5 : vector<1x44xi32>
    %c0_i32_1 = arith.constant 0 : i32
    %7 = vector.broadcast %c0_i32_1 : i32 to vector<1x44xi32>
    %8 = arith.cmpi slt, %4, %7 : vector<1x44xi32>
    %c0_i32_2 = arith.constant 0 : i32
    %9 = arith.cmpi slt, %2, %c0_i32_2 : i32
    %10 = vector.broadcast %9 : i1 to vector<1x44xi1>
    %11 = vector.broadcast %10 : vector<1x44xi1> to vector<1x44xi1>
    %12 = arith.xori %8, %11 : vector<1x44xi1>
    %13 = arith.andi %12, %6 : vector<1x44xi1>
    %14 = vector.broadcast %2 : i32 to vector<1x44xi32>
    %15 = arith.addi %4, %14 : vector<1x44xi32>
    %16 = arith.select %13, %15, %4 : vector<1x44xi1>, vector<1x44xi32>
    %c3_i32 = arith.constant 3 : i32
    %17 = vector.broadcast %c3_i32 : i32 to vector<1x44xi32>
    %18 = arith.cmpi sge, %16, %17 : vector<1x44xi32>
    %c19_i32 = arith.constant 19 : i32
    %19 = vector.broadcast %c19_i32 : i32 to vector<1x44xi32>
    %20 = arith.cmpi slt, %16, %19 : vector<1x44xi32>
    %21 = arith.andi %18, %20 : vector<1x44xi1>
    %cst = arith.constant 0.000000e+00 : f32
    %22 = vector.broadcast %cst : f32 to vector<8x44xf32>
    %c0 = arith.constant 0 : index
    %c0_3 = arith.constant 0 : index
    %23 = vector.load %arg16[%c0, %c0_3] : memref<8x44xf32, #tpu.memory_space<vmem>>, vector<8x44xf32>
    tpu.vector_store %arg16[%c0, %c0_3], %22 {strides = array<i32>} : memref<8x44xf32, #tpu.memory_space<vmem>>, vector<8x44xf32>,
    %c0_4 = arith.constant 0 : index
    %c0_5 = arith.constant 0 : index
    %c0_6 = arith.constant 0 : index
    %24 = vector.load %arg1[%c0_4, %c0_5, %c0_6] : memref<2x4x16xf32, #tpu.memory_space<vmem>>, vector<1x4x16xf32>
    %25 = vector.shape_cast %24 : vector<1x4x16xf32> to vector<4x16xf32>
    %c0_7 = arith.constant 0 : index
    %c3 = arith.constant 3 : index
    %26 = vector.load %arg16[%c0_7, %c3] : memref<8x44xf32, #tpu.memory_space<vmem>>, vector<4x16xf32>
    tpu.vector_store %arg16[%c0_7, %c3], %25 {strides = array<i32>} : memref<8x44xf32, #tpu.memory_space<vmem>>, vector<4x16xf32>,
    %c1 = arith.constant 1 : index
    %c0_8 = arith.constant 0 : index
    %c0_9 = arith.constant 0 : index
    %27 = vector.load %arg1[%c1, %c0_8, %c0_9] : memref<2x4x16xf32, #tpu.memory_space<vmem>>, vector<1x4x16xf32>
    %28 = vector.shape_cast %27 : vector<1x4x16xf32> to vector<4x16xf32>
    %c0_10 = arith.constant 0 : index
    %c25 = arith.constant 25 : index
    %29 = vector.load %arg16[%c0_10, %c25] : memref<8x44xf32, #tpu.memory_space<vmem>>, vector<4x16xf32>
    tpu.vector_store %arg16[%c0_10, %c25], %28 {strides = array<i32>} : memref<8x44xf32, #tpu.memory_space<vmem>>, vector<4x16xf32>,
    %c0_11 = arith.constant 0 : index
    %c0_12 = arith.constant 0 : index
    %30 = vector.load %arg16[%c0_11, %c0_12] : memref<8x44xf32, #tpu.memory_space<vmem>>, vector<8x44xf32>
    %31 = vector.extract_strided_slice %30 {offsets = [0, 0], sizes = [8, 41], strides = [1, 1]} : vector<8x44xf32> to vector<8x41xf32>
    %c0_13 = arith.constant 0 : index
    %c3_14 = arith.constant 3 : index
    %32 = vector.load %arg17[%c0_13, %c3_14] : memref<224x44xf32, #tpu.memory_space<vmem>>, vector<8x41xf32>
    tpu.vector_store %arg17[%c0_13, %c3_14], %31 {strides = array<i32>} : memref<224x44xf32, #tpu.memory_space<vmem>>, vector<8x41xf32>,
    %cst_15 = arith.constant 0.000000e+00 : f32
    %33 = vector.broadcast %cst_15 : f32 to vector<8x3xf32>
    %c0_16 = arith.constant 0 : index
    %c0_17 = arith.constant 0 : index
    %34 = vector.load %arg17[%c0_16, %c0_17] : memref<224x44xf32, #tpu.memory_space<vmem>>, vector<8x3xf32>
    tpu.vector_store %arg17[%c0_16, %c0_17], %33 {strides = array<i32>} : memref<224x44xf32, #tpu.memory_space<vmem>>, vector<8x3xf32>,
    %35 = vector.extract_strided_slice %30 {offsets = [0, 0], sizes = [8, 42], strides = [1, 1]} : vector<8x44xf32> to vector<8x42xf32>
    %c8 = arith.constant 8 : index
    %c2 = arith.constant 2 : index
    %36 = vector.load %arg17[%c8, %c2] : memref<224x44xf32, #tpu.memory_space<vmem>>, vector<8x42xf32>
    tpu.vector_store %arg17[%c8, %c2], %35 {strides = array<i32>} : memref<224x44xf32, #tpu.memory_space<vmem>>, vector<8x42xf32>,
    %cst_18 = arith.constant 0.000000e+00 : f32
    %37 = vector.broadcast %cst_18 : f32 to vector<8x2xf32>
    %c8_19 = arith.constant 8 : index
    %c0_20 = arith.constant 0 : index
    %38 = vector.load %arg17[%c8_19, %c0_20] : memref<224x44xf32, #tpu.memory_space<vmem>>, vector<8x2xf32>
    tpu.vector_store %arg17[%c8_19, %c0_20], %37 {strides = array<i32>} : memref<224x44xf32, #tpu.memory_space<vmem>>, vector<8x2xf32>,
    %39 = vector.extract_strided_slice %30 {offsets = [0, 0], sizes = [8, 43], strides = [1, 1]} : vector<8x44xf32> to vector<8x43xf32>
    %c16 = arith.constant 16 : index
    %c1_21 = arith.constant 1 : index
    %40 = vector.load %arg17[%c16, %c1_21] : memref<224x44xf32, #tpu.memory_space<vmem>>, vector<8x43xf32>
    tpu.vector_store %arg17[%c16, %c1_21], %39 {strides = array<i32>} : memref<224x44xf32, #tpu.memory_space<vmem>>, vector<8x43xf32>,
    %cst_22 = arith.constant 0.000000e+00 : f32
    %41 = vector.broadcast %cst_22 : f32 to vector<8x1xf32>
    %c16_23 = arith.constant 16 : index
    %c0_24 = arith.constant 0 : index
    %42 = vector.load %arg17[%c16_23, %c0_24] : memref<224x44xf32, #tpu.memory_space<vmem>>, vector<8x1xf32>
    tpu.vector_store %arg17[%c16_23, %c0_24], %41 {strides = array<i32>} : memref<224x44xf32, #tpu.memory_space<vmem>>, vector<8x1xf32>,
    %c24 = arith.constant 24 : index
    %c0_25 = arith.constant 0 : index
    %43 = vector.load %arg17[%c24, %c0_25] : memref<224x44xf32, #tpu.memory_space<vmem>>, vector<8x44xf32>
    tpu.vector_store %arg17[%c24, %c0_25], %30 {strides = array<i32>} : memref<224x44xf32, #tpu.memory_space<vmem>>, vector<8x44xf32>,
    %44 = vector.extract_strided_slice %30 {offsets = [0, 1], sizes = [8, 43], strides = [1, 1]} : vector<8x44xf32> to vector<8x43xf32>
    %c32 = arith.constant 32 : index
    %c0_26 = arith.constant 0 : index
    %45 = vector.load %arg17[%c32, %c0_26] : memref<224x44xf32, #tpu.memory_space<vmem>>, vector<8x43xf32>
    tpu.vector_store %arg17[%c32, %c0_26], %44 {strides = array<i32>} : memref<224x44xf32, #tpu.memory_space<vmem>>, vector<8x43xf32>,
    %cst_27 = arith.constant 0.000000e+00 : f32
    %46 = vector.broadcast %cst_27 : f32 to vector<8x1xf32>
    %c32_28 = arith.constant 32 : index
    %c43 = arith.constant 43 : index
    %47 = vector.load %arg17[%c32_28, %c43] : memref<224x44xf32, #tpu.memory_space<vmem>>, vector<8x1xf32>
    tpu.vector_store %arg17[%c32_28, %c43], %46 {strides = array<i32>} : memref<224x44xf32, #tpu.memory_space<vmem>>, vector<8x1xf32>,
    %48 = vector.extract_strided_slice %30 {offsets = [0, 2], sizes = [8, 42], strides = [1, 1]} : vector<8x44xf32> to vector<8x42xf32>
    %c40 = arith.constant 40 : index
    %c0_29 = arith.constant 0 : index
    %49 = vector.load %arg17[%c40, %c0_29] : memref<224x44xf32, #tpu.memory_space<vmem>>, vector<8x42xf32>
    tpu.vector_store %arg17[%c40, %c0_29], %48 {strides = array<i32>} : memref<224x44xf32, #tpu.memory_space<vmem>>, vector<8x42xf32>,
    %cst_30 = arith.constant 0.000000e+00 : f32
    %50 = vector.broadcast %cst_30 : f32 to vector<8x2xf32>
    %c40_31 = arith.constant 40 : index
    %c42 = arith.constant 42 : index
    %51 = vector.load %arg17[%c40_31, %c42] : memref<224x44xf32, #tpu.memory_space<vmem>>, vector<8x2xf32>
    tpu.vector_store %arg17[%c40_31, %c42], %50 {strides = array<i32>} : memref<224x44xf32, #tpu.memory_space<vmem>>, vector<8x2xf32>,
    %52 = vector.extract_strided_slice %30 {offsets = [0, 3], sizes = [8, 41], strides = [1, 1]} : vector<8x44xf32> to vector<8x41xf32>
    %c48 = arith.constant 48 : index
    %c0_32 = arith.constant 0 : index
    %53 = vector.load %arg17[%c48, %c0_32] : memref<224x44xf32, #tpu.memory_space<vmem>>, vector<8x41xf32>
    tpu.vector_store %arg17[%c48, %c0_32], %52 {strides = array<i32>} : memref<224x44xf32, #tpu.memory_space<vmem>>, vector<8x41xf32>,
    %cst_33 = arith.constant 0.000000e+00 : f32
    %54 = vector.broadcast %cst_33 : f32 to vector<8x3xf32>
    %c48_34 = arith.constant 48 : index
    %c41 = arith.constant 41 : index
    %55 = vector.load %arg17[%c48_34, %c41] : memref<224x44xf32, #tpu.memory_space<vmem>>, vector<8x3xf32>
    tpu.vector_store %arg17[%c48_34, %c41], %54 {strides = array<i32>} : memref<224x44xf32, #tpu.memory_space<vmem>>, vector<8x3xf32>,
    %c0_35 = arith.constant 0 : index
    %c0_36 = arith.constant 0 : index
    %56 = vector.load %arg2[%c0_35, %c0_36] : memref<24x56xf32, #tpu.memory_space<vmem>>, vector<24x56xf32>
    %c0_37 = arith.constant 0 : index
    %c0_38 = arith.constant 0 : index
    %57 = vector.load %arg17[%c0_37, %c0_38] : memref<224x44xf32, #tpu.memory_space<vmem>>, vector<56x44xf32>
    %cst_39 = arith.constant dense<0.000000e+00> : vector<24x44xf32>
    %58 = tpu.matmul %56, %57, %cst_39 {dimension_numbers = #tpu.dot_dimension_numbers<[1], [0], [0], [1], [0, 0, 1, 1], [], []>} : vector<24x56xf32>, vector<56x44xf32>, vector<24x44xf32> -> vector<24x44xf32>
    %c0_40 = arith.constant 0 : index
    %c0_41 = arith.constant 0 : index
    %59 = vector.load %arg8[%c0_40, %c0_41] : memref<24x1xf32, #tpu.memory_space<vmem>>, vector<24x1xf32>
    %60 = vector.broadcast %59 : vector<24x1xf32> to vector<24x44xf32>
    %61 = arith.addf %58, %60 : vector<24x44xf32>
    %cst_42 = arith.constant 0.000000e+00 : f32
    %62 = vector.broadcast %cst_42 : f32 to vector<24x44xf32>
    %63 = arith.maximumf %61, %62 : vector<24x44xf32>
    %cst_43 = arith.constant 0.000000e+00 : f32
    %64 = vector.shape_cast %21 : vector<1x44xi1> to vector<1x44xi1>
    %65 = vector.broadcast %64 : vector<1x44xi1> to vector<24x44xi1>
    %66 = vector.broadcast %cst_43 : f32 to vector<24x44xf32>
    %67 = arith.select %65, %63, %66 : vector<24x44xi1>, vector<24x44xf32>
    %68 = vector.extract_strided_slice %67 {offsets = [0, 0], sizes = [24, 42], strides = [1, 1]} : vector<24x44xf32> to vector<24x42xf32>
    %c0_44 = arith.constant 0 : index
    %c2_45 = arith.constant 2 : index
    %69 = vector.load %arg17[%c0_44, %c2_45] : memref<224x44xf32, #tpu.memory_space<vmem>>, vector<24x42xf32>
    tpu.vector_store %arg17[%c0_44, %c2_45], %68 {strides = array<i32>} : memref<224x44xf32, #tpu.memory_space<vmem>>, vector<24x42xf32>,
    %cst_46 = arith.constant 0.000000e+00 : f32
    %70 = vector.broadcast %cst_46 : f32 to vector<24x2xf32>
    %c0_47 = arith.constant 0 : index
    %c0_48 = arith.constant 0 : index
    %71 = vector.load %arg17[%c0_47, %c0_48] : memref<224x44xf32, #tpu.memory_space<vmem>>, vector<24x2xf32>
    tpu.vector_store %arg17[%c0_47, %c0_48], %70 {strides = array<i32>} : memref<224x44xf32, #tpu.memory_space<vmem>>, vector<24x2xf32>,
    %72 = vector.extract_strided_slice %67 {offsets = [0, 0], sizes = [24, 43], strides = [1, 1]} : vector<24x44xf32> to vector<24x43xf32>
    %c24_49 = arith.constant 24 : index
    %c1_50 = arith.constant 1 : index
    %73 = vector.load %arg17[%c24_49, %c1_50] : memref<224x44xf32, #tpu.memory_space<vmem>>, vector<24x43xf32>
    tpu.vector_store %arg17[%c24_49, %c1_50], %72 {strides = array<i32>} : memref<224x44xf32, #tpu.memory_space<vmem>>, vector<24x43xf32>,
    %cst_51 = arith.constant 0.000000e+00 : f32
    %74 = vector.broadcast %cst_51 : f32 to vector<24x1xf32>
    %c24_52 = arith.constant 24 : index
    %c0_53 = arith.constant 0 : index
    %75 = vector.load %arg17[%c24_52, %c0_53] : memref<224x44xf32, #tpu.memory_space<vmem>>, vector<24x1xf32>
    tpu.vector_store %arg17[%c24_52, %c0_53], %74 {strides = array<i32>} : memref<224x44xf32, #tpu.memory_space<vmem>>, vector<24x1xf32>,
    %c48_54 = arith.constant 48 : index
    %c0_55 = arith.constant 0 : index
    %76 = vector.load %arg17[%c48_54, %c0_55] : memref<224x44xf32, #tpu.memory_space<vmem>>, vector<24x44xf32>
    tpu.vector_store %arg17[%c48_54, %c0_55], %67 {strides = array<i32>} : memref<224x44xf32, #tpu.memory_space<vmem>>, vector<24x44xf32>,
    %77 = vector.extract_strided_slice %67 {offsets = [0, 1], sizes = [24, 43], strides = [1, 1]} : vector<24x44xf32> to vector<24x43xf32>
    %c72 = arith.constant 72 : index
    %c0_56 = arith.constant 0 : index
    %78 = vector.load %arg17[%c72, %c0_56] : memref<224x44xf32, #tpu.memory_space<vmem>>, vector<24x43xf32>
    tpu.vector_store %arg17[%c72, %c0_56], %77 {strides = array<i32>} : memref<224x44xf32, #tpu.memory_space<vmem>>, vector<24x43xf32>,
    %cst_57 = arith.constant 0.000000e+00 : f32
    %79 = vector.broadcast %cst_57 : f32 to vector<24x1xf32>
    %c72_58 = arith.constant 72 : index
    %c43_59 = arith.constant 43 : index
    %80 = vector.load %arg17[%c72_58, %c43_59] : memref<224x44xf32, #tpu.memory_space<vmem>>, vector<24x1xf32>
    tpu.vector_store %arg17[%c72_58, %c43_59], %79 {strides = array<i32>} : memref<224x44xf32, #tpu.memory_space<vmem>>, vector<24x1xf32>,
    %81 = vector.extract_strided_slice %67 {offsets = [0, 2], sizes = [24, 42], strides = [1, 1]} : vector<24x44xf32> to vector<24x42xf32>
    %c96 = arith.constant 96 : index
    %c0_60 = arith.constant 0 : index
    %82 = vector.load %arg17[%c96, %c0_60] : memref<224x44xf32, #tpu.memory_space<vmem>>, vector<24x42xf32>
    tpu.vector_store %arg17[%c96, %c0_60], %81 {strides = array<i32>} : memref<224x44xf32, #tpu.memory_space<vmem>>, vector<24x42xf32>,
    %cst_61 = arith.constant 0.000000e+00 : f32
    %83 = vector.broadcast %cst_61 : f32 to vector<24x2xf32>
    %c96_62 = arith.constant 96 : index
    %c42_63 = arith.constant 42 : index
    %84 = vector.load %arg17[%c96_62, %c42_63] : memref<224x44xf32, #tpu.memory_space<vmem>>, vector<24x2xf32>
    tpu.vector_store %arg17[%c96_62, %c42_63], %83 {strides = array<i32>} : memref<224x44xf32, #tpu.memory_space<vmem>>, vector<24x2xf32>,
    %c0_64 = arith.constant 0 : index
    %c0_65 = arith.constant 0 : index
    %85 = vector.load %arg3[%c0_64, %c0_65] : memref<24x120xf32, #tpu.memory_space<vmem>>, vector<24x120xf32>
    %c0_66 = arith.constant 0 : index
    %c0_67 = arith.constant 0 : index
    %86 = vector.load %arg17[%c0_66, %c0_67] : memref<224x44xf32, #tpu.memory_space<vmem>>, vector<120x44xf32>
    %cst_68 = arith.constant dense<0.000000e+00> : vector<24x44xf32>
    %87 = tpu.matmul %85, %86, %cst_68 {dimension_numbers = #tpu.dot_dimension_numbers<[1], [0], [0], [1], [0, 0, 1, 1], [], []>} : vector<24x120xf32>, vector<120x44xf32>, vector<24x44xf32> -> vector<24x44xf32>
    %c0_69 = arith.constant 0 : index
    %c0_70 = arith.constant 0 : index
    %88 = vector.load %arg9[%c0_69, %c0_70] : memref<24x1xf32, #tpu.memory_space<vmem>>, vector<24x1xf32>
    %89 = vector.broadcast %88 : vector<24x1xf32> to vector<24x44xf32>
    %90 = arith.addf %87, %89 : vector<24x44xf32>
    %cst_71 = arith.constant 0.000000e+00 : f32
    %91 = vector.broadcast %cst_71 : f32 to vector<24x44xf32>
    %92 = arith.maximumf %90, %91 : vector<24x44xf32>
    %cst_72 = arith.constant 0.000000e+00 : f32
    %93 = vector.shape_cast %21 : vector<1x44xi1> to vector<1x44xi1>
    %94 = vector.broadcast %93 : vector<1x44xi1> to vector<24x44xi1>
    %95 = vector.broadcast %cst_72 : f32 to vector<24x44xf32>
    %96 = arith.select %94, %92, %95 : vector<24x44xi1>, vector<24x44xf32>
    %97 = vector.extract_strided_slice %96 {offsets = [0, 0], sizes = [24, 43], strides = [1, 1]} : vector<24x44xf32> to vector<24x43xf32>
    %c0_73 = arith.constant 0 : index
    %c1_74 = arith.constant 1 : index
    %98 = vector.load %arg17[%c0_73, %c1_74] : memref<224x44xf32, #tpu.memory_space<vmem>>, vector<24x43xf32>
    tpu.vector_store %arg17[%c0_73, %c1_74], %97 {strides = array<i32>} : memref<224x44xf32, #tpu.memory_space<vmem>>, vector<24x43xf32>,
    %cst_75 = arith.constant 0.000000e+00 : f32
    %99 = vector.broadcast %cst_75 : f32 to vector<24x1xf32>
    %c0_76 = arith.constant 0 : index
    %c0_77 = arith.constant 0 : index
    %100 = vector.load %arg17[%c0_76, %c0_77] : memref<224x44xf32, #tpu.memory_space<vmem>>, vector<24x1xf32>
    tpu.vector_store %arg17[%c0_76, %c0_77], %99 {strides = array<i32>} : memref<224x44xf32, #tpu.memory_space<vmem>>, vector<24x1xf32>,
    %c24_78 = arith.constant 24 : index
    %c0_79 = arith.constant 0 : index
    %101 = vector.load %arg17[%c24_78, %c0_79] : memref<224x44xf32, #tpu.memory_space<vmem>>, vector<24x44xf32>
    tpu.vector_store %arg17[%c24_78, %c0_79], %96 {strides = array<i32>} : memref<224x44xf32, #tpu.memory_space<vmem>>, vector<24x44xf32>,
    %102 = vector.extract_strided_slice %96 {offsets = [0, 1], sizes = [24, 43], strides = [1, 1]} : vector<24x44xf32> to vector<24x43xf32>
    %c48_80 = arith.constant 48 : index
    %c0_81 = arith.constant 0 : index
    %103 = vector.load %arg17[%c48_80, %c0_81] : memref<224x44xf32, #tpu.memory_space<vmem>>, vector<24x43xf32>
    tpu.vector_store %arg17[%c48_80, %c0_81], %102 {strides = array<i32>} : memref<224x44xf32, #tpu.memory_space<vmem>>, vector<24x43xf32>,
    %cst_82 = arith.constant 0.000000e+00 : f32
    %104 = vector.broadcast %cst_82 : f32 to vector<24x1xf32>
    %c48_83 = arith.constant 48 : index
    %c43_84 = arith.constant 43 : index
    %105 = vector.load %arg17[%c48_83, %c43_84] : memref<224x44xf32, #tpu.memory_space<vmem>>, vector<24x1xf32>
    tpu.vector_store %arg17[%c48_83, %c43_84], %104 {strides = array<i32>} : memref<224x44xf32, #tpu.memory_space<vmem>>, vector<24x1xf32>,
    %c0_85 = arith.constant 0 : index
    %c0_86 = arith.constant 0 : index
    %106 = vector.load %arg4[%c0_85, %c0_86] : memref<8x72xf32, #tpu.memory_space<vmem>>, vector<8x72xf32>
    %c0_87 = arith.constant 0 : index
    %c0_88 = arith.constant 0 : index
    %107 = vector.load %arg17[%c0_87, %c0_88] : memref<224x44xf32, #tpu.memory_space<vmem>>, vector<72x44xf32>
    %cst_89 = arith.constant dense<0.000000e+00> : vector<8x44xf32>
    %108 = tpu.matmul %106, %107, %cst_89 {dimension_numbers = #tpu.dot_dimension_numbers<[1], [0], [0], [1], [0, 0, 1, 1], [], []>} : vector<8x72xf32>, vector<72x44xf32>, vector<8x44xf32> -> vector<8x44xf32>
    %c0_90 = arith.constant 0 : index
    %c0_91 = arith.constant 0 : index
    %109 = vector.load %arg10[%c0_90, %c0_91] : memref<8x1xf32, #tpu.memory_space<vmem>>, vector<8x1xf32>
    %110 = vector.broadcast %109 : vector<8x1xf32> to vector<8x44xf32>
    %111 = arith.addf %108, %110 : vector<8x44xf32>
    %cst_92 = arith.constant 0.000000e+00 : f32
    %112 = vector.broadcast %cst_92 : f32 to vector<8x44xf32>
    %113 = arith.maximumf %111, %112 : vector<8x44xf32>
    %cst_93 = arith.constant 0.000000e+00 : f32
    %114 = vector.shape_cast %21 : vector<1x44xi1> to vector<1x44xi1>
    %115 = vector.broadcast %114 : vector<1x44xi1> to vector<8x44xi1>
    %116 = vector.broadcast %cst_93 : f32 to vector<8x44xf32>
    %117 = arith.select %115, %113, %116 : vector<8x44xi1>, vector<8x44xf32>
    %118 = vector.extract_strided_slice %117 {offsets = [0, 3], sizes = [3, 16], strides = [1, 1]} : vector<8x44xf32> to vector<3x16xf32>
    %c0_94 = arith.constant 0 : index
    %c0_95 = arith.constant 0 : index
    %c0_96 = arith.constant 0 : index
    %119 = vector.load %arg15[%c0_94, %c0_95, %c0_96] : memref<2x3x16xf32, #tpu.memory_space<vmem>>, vector<1x3x16xf32>
    %120 = vector.shape_cast %119 : vector<1x3x16xf32> to vector<3x16xf32>
    %121 = vector.shape_cast %118 : vector<3x16xf32> to vector<1x3x16xf32>
    tpu.vector_store %arg15[%c0_94, %c0_95, %c0_96], %121 {strides = array<i32>} : memref<2x3x16xf32, #tpu.memory_space<vmem>>, vector<1x3x16xf32>,
    %122 = vector.extract_strided_slice %117 {offsets = [0, 25], sizes = [3, 16], strides = [1, 1]} : vector<8x44xf32> to vector<3x16xf32>
    %c1_97 = arith.constant 1 : index
    %c0_98 = arith.constant 0 : index
    %c0_99 = arith.constant 0 : index
    %123 = vector.load %arg15[%c1_97, %c0_98, %c0_99] : memref<2x3x16xf32, #tpu.memory_space<vmem>>, vector<1x3x16xf32>
    %124 = vector.shape_cast %123 : vector<1x3x16xf32> to vector<3x16xf32>
    %125 = vector.shape_cast %122 : vector<3x16xf32> to vector<1x3x16xf32>
    tpu.vector_store %arg15[%c1_97, %c0_98, %c0_99], %125 {strides = array<i32>} : memref<2x3x16xf32, #tpu.memory_space<vmem>>, vector<1x3x16xf32>,
    %126 = vector.extract_strided_slice %117 {offsets = [0, 0], sizes = [8, 43], strides = [1, 1]} : vector<8x44xf32> to vector<8x43xf32>
    %c0_100 = arith.constant 0 : index
    %c1_101 = arith.constant 1 : index
    %127 = vector.load %arg17[%c0_100, %c1_101] : memref<224x44xf32, #tpu.memory_space<vmem>>, vector<8x43xf32>
    tpu.vector_store %arg17[%c0_100, %c1_101], %126 {strides = array<i32>} : memref<224x44xf32, #tpu.memory_space<vmem>>, vector<8x43xf32>,
    %cst_102 = arith.constant 0.000000e+00 : f32
    %128 = vector.broadcast %cst_102 : f32 to vector<8x1xf32>
    %c0_103 = arith.constant 0 : index
    %c0_104 = arith.constant 0 : index
    %129 = vector.load %arg17[%c0_103, %c0_104] : memref<224x44xf32, #tpu.memory_space<vmem>>, vector<8x1xf32>
    tpu.vector_store %arg17[%c0_103, %c0_104], %128 {strides = array<i32>} : memref<224x44xf32, #tpu.memory_space<vmem>>, vector<8x1xf32>,
    %c8_105 = arith.constant 8 : index
    %c0_106 = arith.constant 0 : index
    %130 = vector.load %arg17[%c8_105, %c0_106] : memref<224x44xf32, #tpu.memory_space<vmem>>, vector<8x44xf32>
    tpu.vector_store %arg17[%c8_105, %c0_106], %117 {strides = array<i32>} : memref<224x44xf32, #tpu.memory_space<vmem>>, vector<8x44xf32>,
    %131 = vector.extract_strided_slice %117 {offsets = [0, 1], sizes = [8, 43], strides = [1, 1]} : vector<8x44xf32> to vector<8x43xf32>
    %c16_107 = arith.constant 16 : index
    %c0_108 = arith.constant 0 : index
    %132 = vector.load %arg17[%c16_107, %c0_108] : memref<224x44xf32, #tpu.memory_space<vmem>>, vector<8x43xf32>
    tpu.vector_store %arg17[%c16_107, %c0_108], %131 {strides = array<i32>} : memref<224x44xf32, #tpu.memory_space<vmem>>, vector<8x43xf32>,
    %cst_109 = arith.constant 0.000000e+00 : f32
    %133 = vector.broadcast %cst_109 : f32 to vector<8x1xf32>
    %c16_110 = arith.constant 16 : index
    %c43_111 = arith.constant 43 : index
    %134 = vector.load %arg17[%c16_110, %c43_111] : memref<224x44xf32, #tpu.memory_space<vmem>>, vector<8x1xf32>
    tpu.vector_store %arg17[%c16_110, %c43_111], %133 {strides = array<i32>} : memref<224x44xf32, #tpu.memory_space<vmem>>, vector<8x1xf32>,
    %c0_112 = arith.constant 0 : index
    %c0_113 = arith.constant 0 : index
    %135 = vector.load %arg5[%c0_112, %c0_113] : memref<32x24xf32, #tpu.memory_space<vmem>>, vector<32x24xf32>
    %c0_114 = arith.constant 0 : index
    %c0_115 = arith.constant 0 : index
    %136 = vector.load %arg17[%c0_114, %c0_115] : memref<224x44xf32, #tpu.memory_space<vmem>>, vector<24x44xf32>
    %cst_116 = arith.constant dense<0.000000e+00> : vector<32x44xf32>
    %137 = tpu.matmul %135, %136, %cst_116 {dimension_numbers = #tpu.dot_dimension_numbers<[1], [0], [0], [1], [0, 0, 1, 1], [], []>} : vector<32x24xf32>, vector<24x44xf32>, vector<32x44xf32> -> vector<32x44xf32>
    %c0_117 = arith.constant 0 : index
    %c0_118 = arith.constant 0 : index
    %138 = vector.load %arg11[%c0_117, %c0_118] : memref<32x1xf32, #tpu.memory_space<vmem>>, vector<32x1xf32>
    %139 = vector.broadcast %138 : vector<32x1xf32> to vector<32x44xf32>
    %140 = arith.addf %137, %139 : vector<32x44xf32>
    %cst_119 = arith.constant 0.000000e+00 : f32
    %141 = vector.broadcast %cst_119 : f32 to vector<32x44xf32>
    %142 = arith.maximumf %140, %141 : vector<32x44xf32>
    %cst_120 = arith.constant 0.000000e+00 : f32
    %143 = vector.shape_cast %21 : vector<1x44xi1> to vector<1x44xi1>
    %144 = vector.broadcast %143 : vector<1x44xi1> to vector<32x44xi1>
    %145 = vector.broadcast %cst_120 : f32 to vector<32x44xf32>
    %146 = arith.select %144, %142, %145 : vector<32x44xi1>, vector<32x44xf32>
    %147 = vector.extract_strided_slice %146 {offsets = [0, 0], sizes = [32, 42], strides = [1, 1]} : vector<32x44xf32> to vector<32x42xf32>
    %c0_121 = arith.constant 0 : index
    %c2_122 = arith.constant 2 : index
    %148 = vector.load %arg17[%c0_121, %c2_122] : memref<224x44xf32, #tpu.memory_space<vmem>>, vector<32x42xf32>
    tpu.vector_store %arg17[%c0_121, %c2_122], %147 {strides = array<i32>} : memref<224x44xf32, #tpu.memory_space<vmem>>, vector<32x42xf32>,
    %cst_123 = arith.constant 0.000000e+00 : f32
    %149 = vector.broadcast %cst_123 : f32 to vector<32x2xf32>
    %c0_124 = arith.constant 0 : index
    %c0_125 = arith.constant 0 : index
    %150 = vector.load %arg17[%c0_124, %c0_125] : memref<224x44xf32, #tpu.memory_space<vmem>>, vector<32x2xf32>
    tpu.vector_store %arg17[%c0_124, %c0_125], %149 {strides = array<i32>} : memref<224x44xf32, #tpu.memory_space<vmem>>, vector<32x2xf32>,
    %151 = vector.extract_strided_slice %146 {offsets = [0, 0], sizes = [32, 43], strides = [1, 1]} : vector<32x44xf32> to vector<32x43xf32>
    %c32_126 = arith.constant 32 : index
    %c1_127 = arith.constant 1 : index
    %152 = vector.load %arg17[%c32_126, %c1_127] : memref<224x44xf32, #tpu.memory_space<vmem>>, vector<32x43xf32>
    tpu.vector_store %arg17[%c32_126, %c1_127], %151 {strides = array<i32>} : memref<224x44xf32, #tpu.memory_space<vmem>>, vector<32x43xf32>,
    %cst_128 = arith.constant 0.000000e+00 : f32
    %153 = vector.broadcast %cst_128 : f32 to vector<32x1xf32>
    %c32_129 = arith.constant 32 : index
    %c0_130 = arith.constant 0 : index
    %154 = vector.load %arg17[%c32_129, %c0_130] : memref<224x44xf32, #tpu.memory_space<vmem>>, vector<32x1xf32>
    tpu.vector_store %arg17[%c32_129, %c0_130], %153 {strides = array<i32>} : memref<224x44xf32, #tpu.memory_space<vmem>>, vector<32x1xf32>,
    %c64 = arith.constant 64 : index
    %c0_131 = arith.constant 0 : index
    %155 = vector.load %arg17[%c64, %c0_131] : memref<224x44xf32, #tpu.memory_space<vmem>>, vector<32x44xf32>
    tpu.vector_store %arg17[%c64, %c0_131], %146 {strides = array<i32>} : memref<224x44xf32, #tpu.memory_space<vmem>>, vector<32x44xf32>,
    %156 = vector.extract_strided_slice %146 {offsets = [0, 1], sizes = [32, 43], strides = [1, 1]} : vector<32x44xf32> to vector<32x43xf32>
    %c96_132 = arith.constant 96 : index
    %c0_133 = arith.constant 0 : index
    %157 = vector.load %arg17[%c96_132, %c0_133] : memref<224x44xf32, #tpu.memory_space<vmem>>, vector<32x43xf32>
    tpu.vector_store %arg17[%c96_132, %c0_133], %156 {strides = array<i32>} : memref<224x44xf32, #tpu.memory_space<vmem>>, vector<32x43xf32>,
    %cst_134 = arith.constant 0.000000e+00 : f32
    %158 = vector.broadcast %cst_134 : f32 to vector<32x1xf32>
    %c96_135 = arith.constant 96 : index
    %c43_136 = arith.constant 43 : index
    %159 = vector.load %arg17[%c96_135, %c43_136] : memref<224x44xf32, #tpu.memory_space<vmem>>, vector<32x1xf32>
    tpu.vector_store %arg17[%c96_135, %c43_136], %158 {strides = array<i32>} : memref<224x44xf32, #tpu.memory_space<vmem>>, vector<32x1xf32>,
    %160 = vector.extract_strided_slice %146 {offsets = [0, 2], sizes = [32, 42], strides = [1, 1]} : vector<32x44xf32> to vector<32x42xf32>
    %c128 = arith.constant 128 : index
    %c0_137 = arith.constant 0 : index
    %161 = vector.load %arg17[%c128, %c0_137] : memref<224x44xf32, #tpu.memory_space<vmem>>, vector<32x42xf32>
    tpu.vector_store %arg17[%c128, %c0_137], %160 {strides = array<i32>} : memref<224x44xf32, #tpu.memory_space<vmem>>, vector<32x42xf32>,
    %cst_138 = arith.constant 0.000000e+00 : f32
    %162 = vector.broadcast %cst_138 : f32 to vector<32x2xf32>
    %c128_139 = arith.constant 128 : index
    %c42_140 = arith.constant 42 : index
    %163 = vector.load %arg17[%c128_139, %c42_140] : memref<224x44xf32, #tpu.memory_space<vmem>>, vector<32x2xf32>
    tpu.vector_store %arg17[%c128_139, %c42_140], %162 {strides = array<i32>} : memref<224x44xf32, #tpu.memory_space<vmem>>, vector<32x2xf32>,
    %c0_141 = arith.constant 0 : index
    %c0_142 = arith.constant 0 : index
    %164 = vector.load %arg6[%c0_141, %c0_142] : memref<32x160xf32, #tpu.memory_space<vmem>>, vector<32x160xf32>
    %c0_143 = arith.constant 0 : index
    %c0_144 = arith.constant 0 : index
    %165 = vector.load %arg17[%c0_143, %c0_144] : memref<224x44xf32, #tpu.memory_space<vmem>>, vector<160x44xf32>
    %cst_145 = arith.constant dense<0.000000e+00> : vector<32x44xf32>
    %166 = tpu.matmul %164, %165, %cst_145 {dimension_numbers = #tpu.dot_dimension_numbers<[1], [0], [0], [1], [0, 0, 1, 1], [], []>} : vector<32x160xf32>, vector<160x44xf32>, vector<32x44xf32> -> vector<32x44xf32>
    %c0_146 = arith.constant 0 : index
    %c0_147 = arith.constant 0 : index
    %167 = vector.load %arg12[%c0_146, %c0_147] : memref<32x1xf32, #tpu.memory_space<vmem>>, vector<32x1xf32>
    %168 = vector.broadcast %167 : vector<32x1xf32> to vector<32x44xf32>
    %169 = arith.addf %166, %168 : vector<32x44xf32>
    %cst_148 = arith.constant 0.000000e+00 : f32
    %170 = vector.broadcast %cst_148 : f32 to vector<32x44xf32>
    %171 = arith.maximumf %169, %170 : vector<32x44xf32>
    %cst_149 = arith.constant 0.000000e+00 : f32
    %172 = vector.shape_cast %21 : vector<1x44xi1> to vector<1x44xi1>
    %173 = vector.broadcast %172 : vector<1x44xi1> to vector<32x44xi1>
    %174 = vector.broadcast %cst_149 : f32 to vector<32x44xf32>
    %175 = arith.select %173, %171, %174 : vector<32x44xi1>, vector<32x44xf32>
    %176 = vector.extract_strided_slice %175 {offsets = [0, 0], sizes = [32, 41], strides = [1, 1]} : vector<32x44xf32> to vector<32x41xf32>
    %c0_150 = arith.constant 0 : index
    %c3_151 = arith.constant 3 : index
    %177 = vector.load %arg17[%c0_150, %c3_151] : memref<224x44xf32, #tpu.memory_space<vmem>>, vector<32x41xf32>
    tpu.vector_store %arg17[%c0_150, %c3_151], %176 {strides = array<i32>} : memref<224x44xf32, #tpu.memory_space<vmem>>, vector<32x41xf32>,
    %cst_152 = arith.constant 0.000000e+00 : f32
    %178 = vector.broadcast %cst_152 : f32 to vector<32x3xf32>
    %c0_153 = arith.constant 0 : index
    %c0_154 = arith.constant 0 : index
    %179 = vector.load %arg17[%c0_153, %c0_154] : memref<224x44xf32, #tpu.memory_space<vmem>>, vector<32x3xf32>
    tpu.vector_store %arg17[%c0_153, %c0_154], %178 {strides = array<i32>} : memref<224x44xf32, #tpu.memory_space<vmem>>, vector<32x3xf32>,
    %180 = vector.extract_strided_slice %175 {offsets = [0, 0], sizes = [32, 42], strides = [1, 1]} : vector<32x44xf32> to vector<32x42xf32>
    %c32_155 = arith.constant 32 : index
    %c2_156 = arith.constant 2 : index
    %181 = vector.load %arg17[%c32_155, %c2_156] : memref<224x44xf32, #tpu.memory_space<vmem>>, vector<32x42xf32>
    tpu.vector_store %arg17[%c32_155, %c2_156], %180 {strides = array<i32>} : memref<224x44xf32, #tpu.memory_space<vmem>>, vector<32x42xf32>,
    %cst_157 = arith.constant 0.000000e+00 : f32
    %182 = vector.broadcast %cst_157 : f32 to vector<32x2xf32>
    %c32_158 = arith.constant 32 : index
    %c0_159 = arith.constant 0 : index
    %183 = vector.load %arg17[%c32_158, %c0_159] : memref<224x44xf32, #tpu.memory_space<vmem>>, vector<32x2xf32>
    tpu.vector_store %arg17[%c32_158, %c0_159], %182 {strides = array<i32>} : memref<224x44xf32, #tpu.memory_space<vmem>>, vector<32x2xf32>,
    %184 = vector.extract_strided_slice %175 {offsets = [0, 0], sizes = [32, 43], strides = [1, 1]} : vector<32x44xf32> to vector<32x43xf32>
    %c64_160 = arith.constant 64 : index
    %c1_161 = arith.constant 1 : index
    %185 = vector.load %arg17[%c64_160, %c1_161] : memref<224x44xf32, #tpu.memory_space<vmem>>, vector<32x43xf32>
    tpu.vector_store %arg17[%c64_160, %c1_161], %184 {strides = array<i32>} : memref<224x44xf32, #tpu.memory_space<vmem>>, vector<32x43xf32>,
    %cst_162 = arith.constant 0.000000e+00 : f32
    %186 = vector.broadcast %cst_162 : f32 to vector<32x1xf32>
    %c64_163 = arith.constant 64 : index
    %c0_164 = arith.constant 0 : index
    %187 = vector.load %arg17[%c64_163, %c0_164] : memref<224x44xf32, #tpu.memory_space<vmem>>, vector<32x1xf32>
    tpu.vector_store %arg17[%c64_163, %c0_164], %186 {strides = array<i32>} : memref<224x44xf32, #tpu.memory_space<vmem>>, vector<32x1xf32>,
    %c96_165 = arith.constant 96 : index
    %c0_166 = arith.constant 0 : index
    %188 = vector.load %arg17[%c96_165, %c0_166] : memref<224x44xf32, #tpu.memory_space<vmem>>, vector<32x44xf32>
    tpu.vector_store %arg17[%c96_165, %c0_166], %175 {strides = array<i32>} : memref<224x44xf32, #tpu.memory_space<vmem>>, vector<32x44xf32>,
    %189 = vector.extract_strided_slice %175 {offsets = [0, 1], sizes = [32, 43], strides = [1, 1]} : vector<32x44xf32> to vector<32x43xf32>
    %c128_167 = arith.constant 128 : index
    %c0_168 = arith.constant 0 : index
    %190 = vector.load %arg17[%c128_167, %c0_168] : memref<224x44xf32, #tpu.memory_space<vmem>>, vector<32x43xf32>
    tpu.vector_store %arg17[%c128_167, %c0_168], %189 {strides = array<i32>} : memref<224x44xf32, #tpu.memory_space<vmem>>, vector<32x43xf32>,
    %cst_169 = arith.constant 0.000000e+00 : f32
    %191 = vector.broadcast %cst_169 : f32 to vector<32x1xf32>
    %c128_170 = arith.constant 128 : index
    %c43_171 = arith.constant 43 : index
    %192 = vector.load %arg17[%c128_170, %c43_171] : memref<224x44xf32, #tpu.memory_space<vmem>>, vector<32x1xf32>
    tpu.vector_store %arg17[%c128_170, %c43_171], %191 {strides = array<i32>} : memref<224x44xf32, #tpu.memory_space<vmem>>, vector<32x1xf32>,
    %193 = vector.extract_strided_slice %175 {offsets = [0, 2], sizes = [32, 42], strides = [1, 1]} : vector<32x44xf32> to vector<32x42xf32>
    %c160 = arith.constant 160 : index
    %c0_172 = arith.constant 0 : index
    %194 = vector.load %arg17[%c160, %c0_172] : memref<224x44xf32, #tpu.memory_space<vmem>>, vector<32x42xf32>
    tpu.vector_store %arg17[%c160, %c0_172], %193 {strides = array<i32>} : memref<224x44xf32, #tpu.memory_space<vmem>>, vector<32x42xf32>,
    %cst_173 = arith.constant 0.000000e+00 : f32
    %195 = vector.broadcast %cst_173 : f32 to vector<32x2xf32>
    %c160_174 = arith.constant 160 : index
    %c42_175 = arith.constant 42 : index
    %196 = vector.load %arg17[%c160_174, %c42_175] : memref<224x44xf32, #tpu.memory_space<vmem>>, vector<32x2xf32>
    tpu.vector_store %arg17[%c160_174, %c42_175], %195 {strides = array<i32>} : memref<224x44xf32, #tpu.memory_space<vmem>>, vector<32x2xf32>,
    %197 = vector.extract_strided_slice %175 {offsets = [0, 3], sizes = [32, 41], strides = [1, 1]} : vector<32x44xf32> to vector<32x41xf32>
    %c192 = arith.constant 192 : index
    %c0_176 = arith.constant 0 : index
    %198 = vector.load %arg17[%c192, %c0_176] : memref<224x44xf32, #tpu.memory_space<vmem>>, vector<32x41xf32>
    tpu.vector_store %arg17[%c192, %c0_176], %197 {strides = array<i32>} : memref<224x44xf32, #tpu.memory_space<vmem>>, vector<32x41xf32>,
    %cst_177 = arith.constant 0.000000e+00 : f32
    %199 = vector.broadcast %cst_177 : f32 to vector<32x3xf32>
    %c192_178 = arith.constant 192 : index
    %c41_179 = arith.constant 41 : index
    %200 = vector.load %arg17[%c192_178, %c41_179] : memref<224x44xf32, #tpu.memory_space<vmem>>, vector<32x3xf32>
    tpu.vector_store %arg17[%c192_178, %c41_179], %199 {strides = array<i32>} : memref<224x44xf32, #tpu.memory_space<vmem>>, vector<32x3xf32>,
    %c0_180 = arith.constant 0 : index
    %c0_181 = arith.constant 0 : index
    %201 = vector.load %arg7[%c0_180, %c0_181] : memref<8x224xf32, #tpu.memory_space<vmem>>, vector<8x224xf32>
    %c0_182 = arith.constant 0 : index
    %c0_183 = arith.constant 0 : index
    %202 = vector.load %arg17[%c0_182, %c0_183] : memref<224x44xf32, #tpu.memory_space<vmem>>, vector<224x44xf32>
    %cst_184 = arith.constant dense<0.000000e+00> : vector<8x44xf32>
    %203 = tpu.matmul %201, %202, %cst_184 {dimension_numbers = #tpu.dot_dimension_numbers<[1], [0], [0], [1], [0, 0, 1, 1], [], []>} : vector<8x224xf32>, vector<224x44xf32>, vector<8x44xf32> -> vector<8x44xf32>
    %c0_185 = arith.constant 0 : index
    %c0_186 = arith.constant 0 : index
    %204 = vector.load %arg13[%c0_185, %c0_186] : memref<8x1xf32, #tpu.memory_space<vmem>>, vector<8x1xf32>
    %205 = vector.broadcast %204 : vector<8x1xf32> to vector<8x44xf32>
    %206 = arith.addf %203, %205 : vector<8x44xf32>
    %207 = vector.extract_strided_slice %206 {offsets = [0, 3], sizes = [4, 16], strides = [1, 1]} : vector<8x44xf32> to vector<4x16xf32>
    %c0_187 = arith.constant 0 : index
    %c0_188 = arith.constant 0 : index
    %c0_189 = arith.constant 0 : index
    %208 = vector.load %arg14[%c0_187, %c0_188, %c0_189] : memref<2x4x16xf32, #tpu.memory_space<vmem>>, vector<1x4x16xf32>
    %209 = vector.shape_cast %208 : vector<1x4x16xf32> to vector<4x16xf32>
    %210 = vector.shape_cast %207 : vector<4x16xf32> to vector<1x4x16xf32>
    tpu.vector_store %arg14[%c0_187, %c0_188, %c0_189], %210 {strides = array<i32>} : memref<2x4x16xf32, #tpu.memory_space<vmem>>, vector<1x4x16xf32>,
    %211 = vector.extract_strided_slice %206 {offsets = [0, 25], sizes = [4, 16], strides = [1, 1]} : vector<8x44xf32> to vector<4x16xf32>
    %c1_190 = arith.constant 1 : index
    %c0_191 = arith.constant 0 : index
    %c0_192 = arith.constant 0 : index
    %212 = vector.load %arg14[%c1_190, %c0_191, %c0_192] : memref<2x4x16xf32, #tpu.memory_space<vmem>>, vector<1x4x16xf32>
    %213 = vector.shape_cast %212 : vector<1x4x16xf32> to vector<4x16xf32>
    %214 = vector.shape_cast %211 : vector<4x16xf32> to vector<1x4x16xf32>
    tpu.vector_store %arg14[%c1_190, %c0_191, %c0_192], %214 {strides = array<i32>} : memref<2x4x16xf32, #tpu.memory_space<vmem>>, vector<1x4x16xf32>,
    return
  }
  func.func @transform_0(%arg0: i32) -> (i32, i32, i32) {
    %c0_i32 = arith.constant 0 : i32
    %c0_i32_0 = arith.constant 0 : i32
    %c0_i32_1 = arith.constant 0 : i32
    return %arg0, %c0_i32, %c0_i32_0 : i32, i32, i32
  }
  func.func @transform_1(%arg0: i32) -> (i32, i32) {
    %c0_i32 = arith.constant 0 : i32
    %c0_i32_0 = arith.constant 0 : i32
    %c0_i32_1 = arith.constant 0 : i32
    return %c0_i32, %c0_i32_0 : i32, i32
  }
  func.func @transform_2(%arg0: i32) -> (i32, i32) {
    %c0_i32 = arith.constant 0 : i32
    %c0_i32_0 = arith.constant 0 : i32
    %c0_i32_1 = arith.constant 0 : i32
    return %c0_i32, %c0_i32_0 : i32, i32
  }
  func.func @transform_3(%arg0: i32) -> (i32, i32) {
    %c0_i32 = arith.constant 0 : i32
    %c0_i32_0 = arith.constant 0 : i32
    %c0_i32_1 = arith.constant 0 : i32
    return %c0_i32, %c0_i32_0 : i32, i32
  }
  func.func @transform_4(%arg0: i32) -> (i32, i32) {
    %c0_i32 = arith.constant 0 : i32
    %c0_i32_0 = arith.constant 0 : i32
    %c0_i32_1 = arith.constant 0 : i32
    return %c0_i32, %c0_i32_0 : i32, i32
  }
  func.func @transform_5(%arg0: i32) -> (i32, i32) {
    %c0_i32 = arith.constant 0 : i32
    %c0_i32_0 = arith.constant 0 : i32
    %c0_i32_1 = arith.constant 0 : i32
    return %c0_i32, %c0_i32_0 : i32, i32
  }
  func.func @transform_6(%arg0: i32) -> (i32, i32) {
    %c0_i32 = arith.constant 0 : i32
    %c0_i32_0 = arith.constant 0 : i32
    %c0_i32_1 = arith.constant 0 : i32
    return %c0_i32, %c0_i32_0 : i32, i32
  }
  func.func @transform_7(%arg0: i32) -> (i32, i32) {
    %c0_i32 = arith.constant 0 : i32
    %c0_i32_0 = arith.constant 0 : i32
    %c0_i32_1 = arith.constant 0 : i32
    return %c0_i32, %c0_i32_0 : i32, i32
  }
  func.func @transform_8(%arg0: i32) -> (i32, i32) {
    %c0_i32 = arith.constant 0 : i32
    %c0_i32_0 = arith.constant 0 : i32
    %c0_i32_1 = arith.constant 0 : i32
    return %c0_i32, %c0_i32_0 : i32, i32
  }
  func.func @transform_9(%arg0: i32) -> (i32, i32) {
    %c0_i32 = arith.constant 0 : i32
    %c0_i32_0 = arith.constant 0 : i32
    %c0_i32_1 = arith.constant 0 : i32
    return %c0_i32, %c0_i32_0 : i32, i32
  }
  func.func @transform_10(%arg0: i32) -> (i32, i32) {
    %c0_i32 = arith.constant 0 : i32
    %c0_i32_0 = arith.constant 0 : i32
    %c0_i32_1 = arith.constant 0 : i32
    return %c0_i32, %c0_i32_0 : i32, i32
  }
  func.func @transform_11(%arg0: i32) -> (i32, i32) {
    %c0_i32 = arith.constant 0 : i32
    %c0_i32_0 = arith.constant 0 : i32
    %c0_i32_1 = arith.constant 0 : i32
    return %c0_i32, %c0_i32_0 : i32, i32
  }
  func.func @transform_12(%arg0: i32) -> (i32, i32) {
    %c0_i32 = arith.constant 0 : i32
    %c0_i32_0 = arith.constant 0 : i32
    %c0_i32_1 = arith.constant 0 : i32
    return %c0_i32, %c0_i32_0 : i32, i32
  }
  func.func @transform_13(%arg0: i32) -> (i32, i32, i32) {
    %c0_i32 = arith.constant 0 : i32
    %c0_i32_0 = arith.constant 0 : i32
    %c0_i32_1 = arith.constant 0 : i32
    return %arg0, %c0_i32, %c0_i32_0 : i32, i32, i32
  }
  func.func @transform_14(%arg0: i32) -> (i32, i32, i32) {
    %c0_i32 = arith.constant 0 : i32
    %c0_i32_0 = arith.constant 0 : i32
    %c0_i32_1 = arith.constant 0 : i32
    return %arg0, %c0_i32, %c0_i32_0 : i32, i32, i32
  }
}

</mosaic_0001>

<bundles_post_ra>
// kernel: tpu_custom_call.1
= control target key start
LH: loop header
LB: loop body
LE: loop exit
PB: predicated region body
PF: predicated region fallthrough
CT: control target
= control target key end

     0   :  { %s1454_s15 = smov 3   ;;  %vm68_vm0 = vcmask 359424   ;;  %v1455_v2 = vmov 0.0   ;;  %s2100_s0 = inlined_call_operand.vmem [shape: f32[2,4,16], index: 0, kind: input, shape index: {}]   ;;  %s2101_s1 = inlined_call_operand.vmem [shape: f32[24,56], index: 1, kind: input, shape index: {}]   ;;  %s2102_s2 = inlined_call_operand.vmem [shape: f32[24,120], index: 2, kind: input, shape index: {}]   ;;  %s2103_s3 = inlined_call_operand.vmem [shape: f32[8,72], index: 3, kind: input, shape index: {}]   ;;  %s2104_s4 = inlined_call_operand.vmem [shape: f32[32,24], index: 4, kind: input, shape index: {}]   ;;  %s2105_s5 = inlined_call_operand.vmem [shape: f32[32,160], index: 5, kind: input, shape index: {}]   ;;  %s2106_s6 = inlined_call_operand.vmem [shape: f32[8,224], index: 6, kind: input, shape index: {}]   ;;  %s2107_s7 = inlined_call_operand.vmem [shape: f32[24,1], index: 7, kind: input, shape index: {}]   ;;  %s2108_s8 = inlined_call_operand.vmem [shape: f32[24,1], index: 8, kind: input, shape index: {}]   ;;  %s2109_s9 = inlined_call_operand.vmem [shape: f32[8,1], index: 9, kind: input, shape index: {}]   ;;  %s2110_s10 = inlined_call_operand.vmem [shape: f32[32,1], index: 10, kind: input, shape index: {}]   ;;  %s2111_s11 = inlined_call_operand.vmem [shape: f32[32,1], index: 11, kind: input, shape index: {}]   ;;  %s2112_s12 = inlined_call_operand.vmem [shape: f32[8,1], index: 12, kind: input, shape index: {}]   ;;  %s2113_s13 = inlined_call_operand.hbm [shape: f32[2,4,16], index: 13, kind: output, shape index: {0}]   ;;  %s2114_s14 = inlined_call_operand.vmem [shape: f32[2,3,16], index: 14, kind: output, shape index: {1}]  }
   0x1   :  { %v70_v0 = vld [vmem:[%s2100_s0] sm:$0xf]  ;;  %v1256_v1 = vld [vmem:[%s2100_s0 + $0x4] sm:$0xf]  ;;  %69 = vst.msk [vmem:[#allocation2] sm:$0xff] %vm68_vm0, %v1455_v2  ;;  %1319 = vmatprep.subr.mxu0 %v1455_v2  ;;  %1342 = vmatprep.subr.mxu1 %v1455_v2 }
   0x2   :  { %72 = vrot.lane.b32.xlu0 %v70_v0, %s1454_s15 }
   0x3   :  { %20 = vsyncpa [#allocation5], 0  ;;  %s1456_s18 = smov 25   ;;  %vm75_vm1 = vcmask 150552   ;;  %vm83_vm2 = vcmask 330952   ;;  %s1457_s19 = smov 127   ;;  %v47_v26 = vlaneseq }
   0x4   :  { %s1458_s0 = smov 125   ;;  %s1459_s20 = smov 2   ;;  %vm1462_vm3 = vmmov 0   ;;  %v141_v6 = vld [vmem:[%s2107_s7 + $0x8] sm:$0xff]  ;;  %v142_v7 = vld [vmem:[%s2107_s7 + $0x10] sm:$0xff]  ;;  %v1463_v8 = vmov 0  }
   0x5   :  { %s1460_s21 = smov 126   ;;  %s1461_s22 = smov 1   ;;  %1333 = vmatprep.mubr.msk.f32.mxu0 %vm1462_vm3, %v1455_v2  ;;  %1372 = vmatprep.mubr.msk.f32.mxu1 %vm1462_vm3, %v1455_v2  ;;  %v140_v9 = vld [vmem:[%s2107_s7] sm:$0xff]  ;;  %vm112_vm4 = vcmask 351232   ;;  %vm2116_vm5 = vcmask 334848   ;;  %vm114_vm6 = vcmask 359768  }
   0x6   :  { %80 = vrot.lane.b32.xlu0 %v1256_v1, %s1456_s18  ;;  %1431 = vset.pattern.permute.xlu1 %v1463_v8  ;;  %vm2115_vm7 = vcmask 359752   ;;  %vm97_vm8 = vcmask 359440   ;;  %vm119_vm9 = vcmask 343040   ;;  %vm99_vm10 = vcmask 15360   ;;  %v130_v23 = vld [vmem:[%s2101_s1] sm:$0xff]  ;;  %v131_v24 = vld [vmem:[%s2101_s1 + $0x8] sm:$0xff] }
   0x7   :  { %1430 = vset.pattern.permute.xlu0 %v1463_v8  ;;  %vm121_vm11 = vcmask 359760   ;;  %vm104_vm12 = vcmask 359432   ;;  %vm106_vm13 = vcmask 7168   ;;  %vm2118_vm14 = vcmask 359448   ;;  %v132_v25 = vld [vmem:[%s2101_s1 + $0x10] sm:$0xff]  ;;  %v341_v54 = vld [vmem:[%s2108_s8 + $0x8] sm:$0xff] }
   0x8   :  { %vm2117_vm15 = vcmask 23552   ;;  %v48_v27 = vand.u32 127, %v47_v26  ;;  %v342_v55 = vld [vmem:[%s2108_s8 + $0x10] sm:$0xff]  ;;  %v340_v56 = vld [vmem:[%s2108_s8] sm:$0xff]  ;;  %s1465_s1 = smov [#allocation4]  }
   0x9   :  { %s1241_s23 = sshll.u32 %s1465_s1, 4  ;;  %s1242_s23 = int_to_ptr.vmem [resolvable:$true] %s1241_s23 }
   0xa   :  { %v1614_v28 = vmul.u32.u64.low 3123612579, %v48_v27  ;;  %v1615_v29 = vmul.u32.u64.high 3123612579, %v48_v27, %v1614_v28  ;;  %p1437_p1 = scmp.lt.s32.totalorder %s1242_s23, %s1242_s23 }
   0xc   :  { %v55_v30 = vshrl.u32 %v1615_v29, 4 }
   0xe   :  { %v56_v31 = vmul.u32 22, %v55_v30 }
  0x10   :  { %v57_v32 = vsub.s32 %v48_v27, %v56_v31 }
  0x12   :  { %v63_v34 = vadd.s32 22, %v57_v32 }
  0x74   :  { %v73_v3 = vpop.permute.xlu0 %72 }
  0x75   :  { %76 = vst.msk [vmem:[#allocation2] sm:$0xf] %vm75_vm1, %v73_v3  ;;  %vm158_vm1 = vcmask 457728  }
  0x78   :  { %v81_v4 = vpop.permute.xlu0 %80 }
  0x79   :  { %84 = vst.msk [vmem:[#allocation2] sm:$0xf] %vm83_vm2, %v81_v4  ;;  %vm60_vm2 = vcmp.ne.s32.totalorder %v57_v32, 0 }
  0x80   :  { %v85_v5 = vld [vmem:[#allocation2] sm:$0xff] }
  0x81   :  { %109 = vrot.lane.b32.xlu0 %v85_v5, %s1457_s19  ;;  %108 = vst.msk [vmem:[#allocation3 + $0x18] sm:$0xff] %vm68_vm0, %v85_v5  ;;  %123 = vrot.lane.b32.xlu1 %v85_v5, %s1458_s0 }
  0x85   :  { %94 = vrot.lane.b32.xlu0 %v85_v5, %s1459_s20  ;;  %116 = vrot.lane.b32.xlu1 %v85_v5, %s1460_s21 }
  0x88   :  { %v136_v19 = vld [vmem:[#allocation3 + $0x18] sm:$0xff] }
  0x89   :  { %101 = vrot.lane.b32.xlu1 %v85_v5, %s1461_s22  ;;  %155 = vperm.xlu0 %1430, %v142_v7  }
  0x8d   :  { %87 = vrot.lane.b32.xlu1 %v85_v5, %s1454_s15 }
  0x91   :  { %150 = vperm.xlu1 %1431, %v141_v6  }
  0x95   :  { %145 = vperm.xlu1 %1431, %v140_v9  }
  0xf3   :  { %v110_v10 = vpop.permute.xlu0 %109  ;;  %v124_v11 = vpop.permute.xlu1 %123 }
  0xf4   :  { %113 = vst.msk [vmem:[#allocation3 + $0x20] sm:$0xff] %vm112_vm4, %v110_v10 }
  0xf5   :  { %127 = vst.msk [vmem:[#allocation3 + $0x30] sm:$0xff] %vm2116_vm5, %v124_v11 }
  0xf6   :  { %115 = vst.msk [vmem:[#allocation3 + $0x20] sm:$0xff] %vm114_vm6, %v1455_v2 }
  0xf7   :  { %129 = vst.msk [vmem:[#allocation3 + $0x30] sm:$0xff] %vm2115_vm7, %v1455_v2  ;;  %v95_v12 = vpop.permute.xlu0 %94  ;;  %v117_v13 = vpop.permute.xlu1 %116  ;;  %vm61_vm7 = vcmp.lt.s32.totalorder %v57_v32, 0 }
  0xf8   :  { %98 = vst.msk [vmem:[#allocation3 + $0x8] sm:$0xff] %vm97_vm8, %v95_v12  ;;  %vm62_vm5 = vmand %vm61_vm7, %vm60_vm2  ;;  %vm635_vm7 = vcmask 195584  }
  0xf9   :  { %120 = vst.msk [vmem:[#allocation3 + $0x28] sm:$0xff] %vm119_vm9, %v117_v13  ;;  %v64_v35 = vsel %vm62_vm5, %v63_v34, %v57_v32  ;;  %vm358_vm5 = vcmask 982016  }
  0xfa   :  { %100 = vst.msk [vmem:[#allocation3 + $0x8] sm:$0xff] %vm99_vm10, %v1455_v2 }
  0xfb   :  { %122 = vst.msk [vmem:[#allocation3 + $0x28] sm:$0xff] %vm121_vm11, %v1455_v2  ;;  %v102_v14 = vpop.permute.xlu1 %101 }
  0xfc   :  { %105 = vst.msk [vmem:[#allocation3 + $0x10] sm:$0xff] %vm104_vm12, %v102_v14 }
  0xfd   :  { %107 = vst.msk [vmem:[#allocation3 + $0x10] sm:$0xff] %vm106_vm13, %v1455_v2  ;;  %v137_v18 = vld [vmem:[#allocation3 + $0x20] sm:$0xff] }
  0xfe   :  { %v139_v15 = vld [vmem:[#allocation3 + $0x30] sm:$0xff] }
  0xff   :  { %1320 = vmatpush3.msra.mxu0 %v139_v15  ;;  %v88_v16 = vpop.permute.xlu1 %87 }
 0x100   :  { %1321 = vmatprep.subr.mxu0 %v1455_v2  ;;  %91 = vst.msk [vmem:[#allocation3] sm:$0xff] %vm2118_vm14, %v88_v16 }
 0x101   :  { %93 = vst.msk [vmem:[#allocation3] sm:$0xff] %vm2117_vm15, %v1455_v2  ;;  %v134_v21 = vld [vmem:[#allocation3 + $0x8] sm:$0xff]  ;;  %vm66_vm15 = vcmp.lt.s32.totalorder %v64_v35, 19 }
 0x102   :  { %v138_v17 = vld [vmem:[#allocation3 + $0x28] sm:$0xff] }
 0x103   :  { %1322 = vmatpush3.msra.mxu0 %v138_v17 }
 0x104   :  { %1323 = vmatprep.subr.mxu0 %v1455_v2  ;;  %v135_v20 = vld [vmem:[#allocation3 + $0x10] sm:$0xff]  ;;  %v156_v46 = vpop.permute.xlu0 %155 }
 0x105   :  { %1324 = vmatpush3.msra.mxu0 %v137_v18 }
 0x106   :  { %1325 = vmatprep.subr.mxu0 %v1455_v2 }
 0x107   :  { %1326 = vmatpush3.msra.mxu0 %v136_v19 }
 0x108   :  { %1327 = vmatprep.subr.mxu0 %v1455_v2  ;;  %v133_v22 = vld [vmem:[#allocation3] sm:$0xff] }
 0x109   :  { %1328 = vmatpush3.msra.mxu0 %v135_v20 }
 0x10a   :  { %1329 = vmatprep.subr.mxu0 %v1455_v2 }
 0x10b   :  { %1330 = vmatpush3.msra.mxu0 %v134_v21  ;;  %v322_v21 = vld [vmem:[%s2102_s2] sm:$0xff] }
 0x10c   :  { %1331 = vmatprep.subr.mxu0 %v1455_v2  ;;  %v151_v33 = vpop.permute.xlu1 %150 }
 0x10d   :  { %1332 = vmatpush3.msra.mxu0 %v133_v22  ;;  %v323_v22 = vld [vmem:[%s2102_s2 + $0x8] sm:$0xff] }
 0x10e   :  { %1334 = vmatmul.mubr.msk.f32.vlgmr.msra.gmra.mxu0 %vm158_vm1, %v130_v23  ;;  %1381 = vmatprep.subr.mxu0 %v1455_v2  ;;  %v324_v23 = vld [vmem:[%s2102_s2 + $0x10] sm:$0xff] }
 0x10f   :  { %1336 = vmatprep.mubr.msk.f32.mxu0 %vm1462_vm3, %v1455_v2 }
 0x110   :  { %v146_v36 = vpop.permute.xlu1 %145 }
 0x112   :  { %1337 = vmatmul.mubr.msk.f32.gmra.mxu0 %vm158_vm1, %v131_v24 }
 0x113   :  { %1339 = vmatprep.mubr.msk.f32.mxu0 %vm1462_vm3, %v1455_v2 }
 0x116   :  { %1340 = vmatmul.mubr.msk.f32.gmra.mxu0 %vm158_vm1, %v132_v25  ;;  %vm65_vm1 = vcmp.ge.s32.totalorder %v64_v35, 3 }
 0x117   :  { %1399 = vmatprep.mubr.msk.f32.mxu0 %vm1462_vm3, %v1455_v2  ;;  %vm1618_vm14 = vmand %vm65_vm1, %vm66_vm15  ;;  %vm881_vm15 = vcmask 261120  }
 0x1ce   :  { %v234_v37 = vpop.f32.mrf.mxu0 }
 0x1cf   :  { %v235_v38 = vadd.f32 %v234_v37, %v146_v36 }
 0x1d0   :  { %v1335_v40 = vpop.f32.mrf.mxu0 }
 0x1d1   :  { %v248_v41 = vmax.f32 %v235_v38, 0.0 }
 0x1d2   :  { %v239_v42 = vpop.f32.mrf.mxu0 }
 0x1d3   :  { %v253_v43 = vsel %vm1618_vm14, %v248_v41, 0.0  ;;  %v240_v44 = vadd.f32 %v239_v42, %v151_v33 }
 0x1d4   :  { %289 = vst.msk [vmem:[#allocation3 + $0x30] sm:$0xff] %vm68_vm0, %v253_v43  ;;  %v1338_v45 = vpop.f32.mrf.mxu0 }
 0x1d5   :  { %v249_v47 = vmax.f32 %v240_v44, 0.0 }
 0x1d6   :  { %v244_v48 = vpop.f32.mrf.mxu0 }
 0x1d7   :  { %v254_v49 = vsel %vm1618_vm14, %v249_v47, 0.0  ;;  %v245_v50 = vadd.f32 %v244_v48, %v156_v46 }
 0x1d8   :  { %290 = vst.msk [vmem:[#allocation3 + $0x38] sm:$0xff] %vm68_vm0, %v254_v49  ;;  %v1341_v51 = vpop.f32.mrf.mxu0  ;;  %309 = vrot.lane.b32.xlu1 %v254_v49, %s1460_s21 }
 0x1d9   :  { %v250_v52 = vmax.f32 %v245_v50, 0.0 }
 0x1db   :  { %v255_v53 = vsel %vm1618_vm14, %v250_v52, 0.0  ;;  %v331_v14 = vld [vmem:[#allocation3 + $0x30] sm:$0xff] }
 0x1dc   :  { %291 = vst.msk [vmem:[#allocation3 + $0x40] sm:$0xff] %vm68_vm0, %v255_v53  ;;  %311 = vrot.lane.b32.xlu0 %v255_v53, %s1460_s21  ;;  %296 = vrot.lane.b32.xlu1 %v255_v53, %s1457_s19 }
 0x1df   :  { %v332_v13 = vld [vmem:[#allocation3 + $0x38] sm:$0xff] }
 0x1e0   :  { %292 = vrot.lane.b32.xlu1 %v253_v43, %s1457_s19  ;;  %307 = vrot.lane.b32.xlu0 %v253_v43, %s1460_s21 }
 0x1e3   :  { %v333_v12 = vld [vmem:[#allocation3 + $0x40] sm:$0xff] }
 0x1e4   :  { %276 = vrot.lane.b32.xlu1 %v254_v49, %s1461_s22  ;;  %294 = vrot.lane.b32.xlu0 %v254_v49, %s1457_s19 }
 0x1e8   :  { %263 = vrot.lane.b32.xlu1 %v255_v53, %s1459_s20  ;;  %278 = vrot.lane.b32.xlu0 %v255_v53, %s1461_s22 }
 0x1ec   :  { %259 = vrot.lane.b32.xlu1 %v253_v43, %s1459_s20  ;;  %274 = vrot.lane.b32.xlu0 %v253_v43, %s1461_s22  ;;  %v500_v43 = vld [vmem:[%s2109_s9] sm:$0xff] }
 0x1f0   :  { %350 = vperm.xlu1 %1431, %v341_v54   ;;  %261 = vrot.lane.b32.xlu0 %v254_v49, %s1459_s20 }
 0x1f4   :  { %355 = vperm.xlu0 %1430, %v342_v55  }
 0x1f8   :  { %345 = vperm.xlu0 %1430, %v340_v56  }
 0x24a   :  { %v310_v57 = vpop.permute.xlu1 %309 }
 0x24b   :  { %317 = vst.msk [vmem:[#allocation3 + $0x68] sm:$0xff] %vm119_vm9, %v310_v57 }
 0x24c   :  { %320 = vst.msk [vmem:[#allocation3 + $0x68] sm:$0xff] %vm121_vm11, %v1455_v2 }
 0x24e   :  { %v312_v58 = vpop.permute.xlu0 %311  ;;  %v297_v59 = vpop.permute.xlu1 %296 }
 0x24f   :  { %318 = vst.msk [vmem:[#allocation3 + $0x70] sm:$0xff] %vm119_vm9, %v312_v58 }
 0x250   :  { %303 = vst.msk [vmem:[#allocation3 + $0x58] sm:$0xff] %vm112_vm4, %v297_v59  ;;  %v490_v59 = vld [vmem:[%s2103_s3] sm:$0xff] }
 0x251   :  { %321 = vst.msk [vmem:[#allocation3 + $0x70] sm:$0xff] %vm121_vm11, %v1455_v2 }
 0x252   :  { %306 = vst.msk [vmem:[#allocation3 + $0x58] sm:$0xff] %vm114_vm6, %v1455_v2  ;;  %v293_v60 = vpop.permute.xlu1 %292  ;;  %v308_v61 = vpop.permute.xlu0 %307 }
 0x253   :  { %301 = vst.msk [vmem:[#allocation3 + $0x48] sm:$0xff] %vm112_vm4, %v293_v60  ;;  %v338_v1 = vld [vmem:[#allocation3 + $0x68] sm:$0xff] }
 0x254   :  { %316 = vst.msk [vmem:[#allocation3 + $0x60] sm:$0xff] %vm119_vm9, %v308_v61 }
 0x255   :  { %304 = vst.msk [vmem:[#allocation3 + $0x48] sm:$0xff] %vm114_vm6, %v1455_v2 }
 0x256   :  { %319 = vst.msk [vmem:[#allocation3 + $0x60] sm:$0xff] %vm121_vm11, %v1455_v2  ;;  %v277_v62 = vpop.permute.xlu1 %276  ;;  %v295_v63 = vpop.permute.xlu0 %294 }
 0x257   :  { %284 = vst.msk [vmem:[#allocation3 + $0x20] sm:$0xff] %vm104_vm12, %v277_v62 }
 0x258   :  { %302 = vst.msk [vmem:[#allocation3 + $0x50] sm:$0xff] %vm112_vm4, %v295_v63  ;;  %v339_v0 = vld [vmem:[#allocation3 + $0x70] sm:$0xff] }
 0x259   :  { %287 = vst.msk [vmem:[#allocation3 + $0x20] sm:$0xff] %vm106_vm13, %v1455_v2  ;;  %1343 = vmatpush3.msra.mxu1 %v339_v0  ;;  %v336_v6 = vld [vmem:[#allocation3 + $0x58] sm:$0xff] }
 0x25a   :  { %305 = vst.msk [vmem:[#allocation3 + $0x50] sm:$0xff] %vm114_vm6, %v1455_v2  ;;  %1344 = vmatprep.subr.mxu1 %v1455_v2  ;;  %v264_v3 = vpop.permute.xlu1 %263  ;;  %v279_v4 = vpop.permute.xlu0 %278 }
 0x25b   :  { %1345 = vmatpush3.msra.mxu1 %v338_v1  ;;  %270 = vst.msk [vmem:[#allocation3 + $0x10] sm:$0xff] %vm97_vm8, %v264_v3  ;;  %v604_v3 = vld [vmem:[%s2104_s4] sm:$0xff] }
 0x25c   :  { %285 = vst.msk [vmem:[#allocation3 + $0x28] sm:$0xff] %vm104_vm12, %v279_v4  ;;  %1346 = vmatprep.subr.mxu1 %v1455_v2  ;;  %v334_v10 = vld [vmem:[#allocation3 + $0x48] sm:$0xff] }
 0x25d   :  { %v337_v5 = vld [vmem:[#allocation3 + $0x60] sm:$0xff]  ;;  %273 = vst.msk [vmem:[#allocation3 + $0x10] sm:$0xff] %vm99_vm10, %v1455_v2  ;;  %v613_v4 = vld [vmem:[%s2110_s10 + $0x10] sm:$0xff] }
 0x25e   :  { %288 = vst.msk [vmem:[#allocation3 + $0x28] sm:$0xff] %vm106_vm13, %v1455_v2  ;;  %1347 = vmatpush3.msra.mxu1 %v337_v5  ;;  %v260_v7 = vpop.permute.xlu1 %259  ;;  %v275_v8 = vpop.permute.xlu0 %274  ;;  %v614_v5 = vld [vmem:[%s2110_s10 + $0x18] sm:$0xff] }
 0x25f   :  { %1348 = vmatprep.subr.mxu1 %v1455_v2  ;;  %268 = vst.msk [vmem:[#allocation3] sm:$0xff] %vm97_vm8, %v260_v7  ;;  %v612_v7 = vld [vmem:[%s2110_s10 + $0x8] sm:$0xff] }
 0x260   :  { %1349 = vmatpush3.msra.mxu1 %v336_v6  ;;  %283 = vst.msk [vmem:[#allocation3 + $0x18] sm:$0xff] %vm104_vm12, %v275_v8  ;;  %v329_v16 = vld [vmem:[#allocation3 + $0x20] sm:$0xff]  ;;  %v611_v6 = vld [vmem:[%s2110_s10] sm:$0xff] }
 0x261   :  { %1350 = vmatprep.subr.mxu1 %v1455_v2  ;;  %v335_v9 = vld [vmem:[#allocation3 + $0x50] sm:$0xff]  ;;  %271 = vst.msk [vmem:[#allocation3] sm:$0xff] %vm99_vm10, %v1455_v2 }
 0x262   :  { %286 = vst.msk [vmem:[#allocation3 + $0x18] sm:$0xff] %vm106_vm13, %v1455_v2  ;;  %1351 = vmatpush3.msra.mxu1 %v335_v9  ;;  %v262_v11 = vpop.permute.xlu0 %261 }
 0x263   :  { %1352 = vmatprep.subr.mxu1 %v1455_v2  ;;  %269 = vst.msk [vmem:[#allocation3 + $0x8] sm:$0xff] %vm97_vm8, %v262_v11 }
 0x264   :  { %1353 = vmatpush3.msra.mxu1 %v334_v10  ;;  %272 = vst.msk [vmem:[#allocation3 + $0x8] sm:$0xff] %vm99_vm10, %v1455_v2  ;;  %v327_v18 = vld [vmem:[#allocation3 + $0x10] sm:$0xff] }
 0x265   :  { %1354 = vmatprep.subr.mxu1 %v1455_v2  ;;  %v330_v15 = vld [vmem:[#allocation3 + $0x28] sm:$0xff] }
 0x266   :  { %1355 = vmatpush3.msra.mxu1 %v333_v12 }
 0x267   :  { %1356 = vmatprep.subr.mxu1 %v1455_v2 }
 0x268   :  { %1357 = vmatpush3.msra.mxu1 %v332_v13  ;;  %v325_v20 = vld [vmem:[#allocation3] sm:$0xff] }
 0x269   :  { %1358 = vmatprep.subr.mxu1 %v1455_v2  ;;  %v328_v17 = vld [vmem:[#allocation3 + $0x18] sm:$0xff]  ;;  %v605_v13 = vld [vmem:[%s2104_s4 + $0x8] sm:$0xff] }
 0x26a   :  { %1359 = vmatpush3.msra.mxu1 %v331_v14  ;;  %v606_v14 = vld [vmem:[%s2104_s4 + $0x10] sm:$0xff] }
 0x26b   :  { %1360 = vmatprep.subr.mxu1 %v1455_v2  ;;  %v326_v19 = vld [vmem:[#allocation3 + $0x8] sm:$0xff]  ;;  %v351_v30 = vpop.permute.xlu1 %350 }
 0x26c   :  { %1361 = vmatpush3.msra.mxu1 %v330_v15  ;;  %v607_v15 = vld [vmem:[%s2104_s4 + $0x18] sm:$0xff] }
 0x26d   :  { %1362 = vmatprep.subr.mxu1 %v1455_v2 }
 0x26e   :  { %1363 = vmatpush3.msra.mxu1 %v329_v16 }
 0x26f   :  { %1364 = vmatprep.subr.mxu1 %v1455_v2  ;;  %v356_v24 = vpop.permute.xlu0 %355 }
 0x270   :  { %1365 = vmatpush3.msra.mxu1 %v328_v17 }
 0x271   :  { %1366 = vmatprep.subr.mxu1 %v1455_v2 }
 0x272   :  { %1367 = vmatpush3.msra.mxu1 %v327_v18 }
 0x273   :  { %1368 = vmatprep.subr.mxu1 %v1455_v2  ;;  %v346_v25 = vpop.permute.xlu0 %345 }
 0x274   :  { %1369 = vmatpush3.msra.mxu1 %v326_v19 }
 0x275   :  { %1370 = vmatprep.subr.mxu1 %v1455_v2 }
 0x276   :  { %1371 = vmatpush3.msra.mxu1 %v325_v20 }
 0x277   :  { %1373 = vmatmul.mubr.msk.f32.vlgmr.msra.gmra.mxu1 %vm358_vm5, %v322_v21  ;;  %894 = vmatprep.subr.mxu1 %v1455_v2 }
 0x278   :  { %1375 = vmatprep.mubr.msk.f32.mxu1 %vm1462_vm3, %v1455_v2 }
 0x27b   :  { %1376 = vmatmul.mubr.msk.f32.gmra.mxu1 %vm358_vm5, %v323_v22 }
 0x27c   :  { %1378 = vmatprep.mubr.msk.f32.mxu1 %vm1462_vm3, %v1455_v2  ;;  %vm506_vm3 = vcmask 588800  }
 0x27f   :  { %1379 = vmatmul.mubr.msk.f32.gmra.mxu1 %vm358_vm5, %v324_v23 }
 0x337   :  { %v434_v26 = vpop.f32.mrf.mxu1 }
 0x338   :  { %v435_v27 = vadd.f32 %v434_v26, %v346_v25 }
 0x339   :  { %v1374_v28 = vpop.f32.mrf.mxu1 }
 0x33a   :  { %v448_v29 = vmax.f32 %v435_v27, 0.0 }
 0x33b   :  { %v439_v31 = vpop.f32.mrf.mxu1 }
 0x33c   :  { %v440_v32 = vadd.f32 %v439_v31, %v351_v30  ;;  %v451_v33 = vsel %vm1618_vm14, %v448_v29, 0.0 }
 0x33d   :  { %v1377_v34 = vpop.f32.mrf.mxu1  ;;  %472 = vst.msk [vmem:[#allocation3 + $0x18] sm:$0xff] %vm68_vm0, %v451_v33 }
 0x33e   :  { %v449_v35 = vmax.f32 %v440_v32, 0.0 }
 0x33f   :  { %v444_v36 = vpop.f32.mrf.mxu1 }
 0x340   :  { %v445_v37 = vadd.f32 %v444_v36, %v356_v24  ;;  %v452_v38 = vsel %vm1618_vm14, %v449_v35, 0.0  ;;  %v860_v36 = vld [vmem:[%s2111_s11 + $0x18] sm:$0xff] }
 0x341   :  { %477 = vrot.lane.b32.xlu0 %v452_v38, %s1457_s19  ;;  %473 = vst.msk [vmem:[#allocation3 + $0x20] sm:$0xff] %vm68_vm0, %v452_v38  ;;  %v1380_v40 = vpop.f32.mrf.mxu1 }
 0x342   :  { %v450_v41 = vmax.f32 %v445_v37, 0.0  ;;  %v859_v37 = vld [vmem:[%s2111_s11 + $0x10] sm:$0xff]  ;;  %v830_v40 = vld [vmem:[%s2105_s5 + $0x8] sm:$0xff] }
 0x343   :  { %1269 = vmatprep.mubr.msk.f32.mxu1 %vm881_vm15, %v830_v40 }
 0x344   :  { %v453_v42 = vsel %vm1618_vm14, %v450_v41, 0.0  ;;  %v494_v55 = vld [vmem:[#allocation3 + $0x18] sm:$0xff] }
 0x345   :  { %461 = vrot.lane.b32.xlu0 %v453_v42, %s1461_s22  ;;  %474 = vst.msk [vmem:[#allocation3 + $0x28] sm:$0xff] %vm68_vm0, %v453_v42  ;;  %479 = vrot.lane.b32.xlu1 %v453_v42, %s1457_s19  ;;  %v857_v41 = vld [vmem:[%s2111_s11] sm:$0xff] }
 0x348   :  { %v495_v54 = vld [vmem:[#allocation3 + $0x20] sm:$0xff] }
 0x349   :  { %457 = vrot.lane.b32.xlu0 %v451_v33, %s1461_s22  ;;  %475 = vrot.lane.b32.xlu1 %v451_v33, %s1457_s19 }
 0x34c   :  { %v496_v53 = vld [vmem:[#allocation3 + $0x28] sm:$0xff] }
 0x34d   :  { %459 = vrot.lane.b32.xlu1 %v452_v38, %s1461_s22  ;;  %v858_v38 = vld [vmem:[%s2111_s11 + $0x8] sm:$0xff] }
 0x351   :  { %503 = vperm.xlu1 %1431, %v500_v43  }
 0x3b3   :  { %v478_v44 = vpop.permute.xlu0 %477 }
 0x3b4   :  { %485 = vst.msk [vmem:[#allocation3 + $0x38] sm:$0xff] %vm112_vm4, %v478_v44 }
 0x3b5   :  { %488 = vst.msk [vmem:[#allocation3 + $0x38] sm:$0xff] %vm114_vm6, %v1455_v2 }
 0x3b7   :  { %v462_v45 = vpop.permute.xlu0 %461  ;;  %v480_v46 = vpop.permute.xlu1 %479 }
 0x3b8   :  { %468 = vst.msk [vmem:[#allocation3 + $0x10] sm:$0xff] %vm104_vm12, %v462_v45 }
 0x3b9   :  { %486 = vst.msk [vmem:[#allocation3 + $0x40] sm:$0xff] %vm112_vm4, %v480_v46 }
 0x3ba   :  { %471 = vst.msk [vmem:[#allocation3 + $0x10] sm:$0xff] %vm106_vm13, %v1455_v2 }
 0x3bb   :  { %489 = vst.msk [vmem:[#allocation3 + $0x40] sm:$0xff] %vm114_vm6, %v1455_v2  ;;  %v458_v47 = vpop.permute.xlu0 %457  ;;  %v476_v48 = vpop.permute.xlu1 %475 }
 0x3bc   :  { %466 = vst.msk [vmem:[#allocation3] sm:$0xff] %vm104_vm12, %v458_v47  ;;  %v498_v51 = vld [vmem:[#allocation3 + $0x38] sm:$0xff] }
 0x3bd   :  { %484 = vst.msk [vmem:[#allocation3 + $0x30] sm:$0xff] %vm112_vm4, %v476_v48 }
 0x3be   :  { %469 = vst.msk [vmem:[#allocation3] sm:$0xff] %vm106_vm13, %v1455_v2 }
 0x3bf   :  { %487 = vst.msk [vmem:[#allocation3 + $0x30] sm:$0xff] %vm114_vm6, %v1455_v2  ;;  %v460_v49 = vpop.permute.xlu1 %459 }
 0x3c0   :  { %467 = vst.msk [vmem:[#allocation3 + $0x8] sm:$0xff] %vm104_vm12, %v460_v49 }
 0x3c1   :  { %470 = vst.msk [vmem:[#allocation3 + $0x8] sm:$0xff] %vm106_vm13, %v1455_v2  ;;  %v493_v56 = vld [vmem:[#allocation3 + $0x10] sm:$0xff] }
 0x3c2   :  { %v499_v50 = vld [vmem:[#allocation3 + $0x40] sm:$0xff] }
 0x3c3   :  { %1382 = vmatpush3.msra.mxu0 %v499_v50 }
 0x3c4   :  { %1383 = vmatprep.subr.mxu0 %v1455_v2 }
 0x3c5   :  { %1384 = vmatpush3.msra.mxu0 %v498_v51  ;;  %v491_v58 = vld [vmem:[#allocation3] sm:$0xff] }
 0x3c6   :  { %1385 = vmatprep.subr.mxu0 %v1455_v2  ;;  %v497_v52 = vld [vmem:[#allocation3 + $0x30] sm:$0xff] }
 0x3c7   :  { %1386 = vmatpush3.msra.mxu0 %v497_v52 }
 0x3c8   :  { %1387 = vmatprep.subr.mxu0 %v1455_v2  ;;  %v492_v57 = vld [vmem:[#allocation3 + $0x8] sm:$0xff] }
 0x3c9   :  { %1388 = vmatpush3.msra.mxu0 %v496_v53 }
 0x3ca   :  { %1389 = vmatprep.subr.mxu0 %v1455_v2 }
 0x3cb   :  { %1390 = vmatpush3.msra.mxu0 %v495_v54 }
 0x3cc   :  { %1391 = vmatprep.subr.mxu0 %v1455_v2  ;;  %v504_v60 = vpop.permute.xlu1 %503 }
 0x3cd   :  { %1392 = vmatpush3.msra.mxu0 %v494_v55 }
 0x3ce   :  { %1393 = vmatprep.subr.mxu0 %v1455_v2 }
 0x3cf   :  { %1394 = vmatpush3.msra.mxu0 %v493_v56 }
 0x3d0   :  { %1395 = vmatprep.subr.mxu0 %v1455_v2 }
 0x3d1   :  { %1396 = vmatpush3.msra.mxu0 %v492_v57 }
 0x3d2   :  { %1397 = vmatprep.subr.mxu0 %v1455_v2 }
 0x3d3   :  { %1398 = vmatpush3.msra.mxu0 %v491_v58 }
 0x3d4   :  { %1400 = vmatmul.mubr.msk.f32.vlgmr.msra.gmra.mxu0 %vm506_vm3, %v490_v59  ;;  %vm2129_vm3 = vcmask 334848  }
 0x3d5   :  { %1408 = vmatprep.mubr.msk.f32.mxu0 %vm635_vm7, %v604_v3 }
 0x494   :  { %v576_v61 = vpop.f32.mrf.mxu0 }
 0x495   :  { %v577_v62 = vadd.f32 %v576_v61, %v504_v60 }
 0x496   :  { %v1401_v63 = vpop.f32.mrf.mxu0 }
 0x497   :  { %v580_v0 = vmax.f32 %v577_v62, 0.0 }
 0x499   :  { %v1765_v1 = vsel %vm1618_vm14, %v580_v0, 0.0 }
 0x49a   :  { %598 = vst.msk [vmem:[#allocation3 + $0x8] sm:$0xff] %vm68_vm0, %v1765_v1  ;;  %593 = vrot.lane.b32.xlu1 %v1765_v1, %s1461_s22  ;;  %599 = vrot.lane.b32.xlu0 %v1765_v1, %s1457_s19 }
 0x49e   :  { %627 = vperm.xlu1 %1431, %v613_v4   ;;  %632 = vperm.xlu0 %1430, %v614_v5  }
 0x4a1   :  { %v609_v11 = vld [vmem:[#allocation3 + $0x8] sm:$0xff] }
 0x4a2   :  { %617 = vperm.xlu1 %1431, %v611_v6   ;;  %622 = vperm.xlu0 %1430, %v612_v7  }
 0x50c   :  { %v594_v8 = vpop.permute.xlu1 %593  ;;  %v600_v9 = vpop.permute.xlu0 %599 }
 0x50d   :  { %596 = vst.msk [vmem:[#allocation3] sm:$0xff] %vm104_vm12, %v594_v8 }
 0x50e   :  { %602 = vst.msk [vmem:[#allocation3 + $0x10] sm:$0xff] %vm112_vm4, %v600_v9 }
 0x50f   :  { %597 = vst.msk [vmem:[#allocation3] sm:$0xff] %vm106_vm13, %v1455_v2 }
 0x510   :  { %603 = vst.msk [vmem:[#allocation3 + $0x10] sm:$0xff] %vm114_vm6, %v1455_v2 }
 0x516   :  { %v608_v12 = vld [vmem:[#allocation3] sm:$0xff] }
 0x517   :  { %v610_v10 = vld [vmem:[#allocation3 + $0x10] sm:$0xff] }
 0x518   :  { %1402 = vmatprep.subr.mxu0 %v610_v10 }
 0x519   :  { %1403 = vmatpush3.msra.mxu0 %v610_v10  ;;  %v633_v16 = vpop.permute.xlu0 %632  ;;  %v628_v17 = vpop.permute.xlu1 %627 }
 0x51a   :  { %1404 = vmatprep.subr.mxu0 %v609_v11 }
 0x51b   :  { %1405 = vmatpush3.msra.mxu0 %v609_v11 }
 0x51c   :  { %1406 = vmatprep.subr.mxu0 %v608_v12 }
 0x51d   :  { %1407 = vmatpush3.msra.mxu0 %v608_v12  ;;  %v623_v18 = vpop.permute.xlu0 %622  ;;  %v618_v21 = vpop.permute.xlu1 %617 }
 0x51e   :  { %1409 = vmatmul.mubr.msk.f32.vlgmr.msra.gmra.mxu0 %vm635_vm7, %v605_v13  ;;  %1155 = vmatprep.subr.mxu0 %v1455_v2 }
 0x51f   :  { %1411 = vmatprep.mubr.msk.f32.mxu0 %vm635_vm7, %v606_v14 }
 0x522   :  { %1412 = vmatmul.mubr.msk.f32.gmra.mxu0 %vm635_vm7, %v607_v15  ;;  %vm2130_vm7 = vcmask 359752  }
 0x5de   :  { %v1410_v19 = vpop.f32.mrf.mxu0 }
 0x5df   :  { %v720_v20 = vadd.f32 %v1410_v19, %v623_v18  ;;  %v831_v18 = vld [vmem:[%s2105_s5 + $0x10] sm:$0xff]  ;;  %v834_v19 = vld [vmem:[%s2105_s5 + $0x28] sm:$0xff] }
 0x5e0   :  { %v714_v22 = vpop.f32.mrf.mxu0 }
 0x5e1   :  { %v734_v23 = vmax.f32 %v720_v20, 0.0  ;;  %v715_v24 = vadd.f32 %v714_v22, %v618_v21  ;;  %v833_v20 = vld [vmem:[%s2105_s5 + $0x20] sm:$0xff]  ;;  %v836_v21 = vld [vmem:[%s2105_s5 + $0x38] sm:$0xff]  ;;  %v835_v22 = vld [vmem:[%s2105_s5 + $0x30] sm:$0xff] }
 0x5e2   :  { %v1413_v25 = vpop.f32.mrf.mxu0 }
 0x5e3   :  { %v738_v26 = vsel %vm1618_vm14, %v734_v23, 0.0  ;;  %v733_v27 = vmax.f32 %v715_v24, 0.0  ;;  %v730_v28 = vadd.f32 %v1413_v25, %v633_v16  ;;  %v829_v16 = vld [vmem:[%s2105_s5] sm:$0xff] }
 0x5e4   :  { %786 = vst.msk [vmem:[#allocation3 + $0x48] sm:$0xff] %vm68_vm0, %v738_v26  ;;  %v724_v29 = vpop.f32.mrf.mxu0 }
 0x5e5   :  { %v737_v30 = vsel %vm1618_vm14, %v733_v27, 0.0  ;;  %v736_v31 = vmax.f32 %v730_v28, 0.0  ;;  %v725_v32 = vadd.f32 %v724_v29, %v628_v17  ;;  %v832_v17 = vld [vmem:[%s2105_s5 + $0x18] sm:$0xff] }
 0x5e6   :  { %785 = vst.msk [vmem:[#allocation3 + $0x40] sm:$0xff] %vm68_vm0, %v737_v30 }
 0x5e7   :  { %v740_v33 = vsel %vm1618_vm14, %v736_v31, 0.0  ;;  %v735_v34 = vmax.f32 %v725_v32, 0.0 }
 0x5e8   :  { %788 = vst.msk [vmem:[#allocation3 + $0x58] sm:$0xff] %vm68_vm0, %v740_v33  ;;  %795 = vrot.lane.b32.xlu0 %v740_v33, %s1457_s19 }
 0x5e9   :  { %v739_v35 = vsel %vm1618_vm14, %v735_v34, 0.0 }
 0x5ea   :  { %787 = vst.msk [vmem:[#allocation3 + $0x50] sm:$0xff] %vm68_vm0, %v739_v35  ;;  %793 = vrot.lane.b32.xlu1 %v739_v35, %s1457_s19 }
 0x5eb   :  { %v846_v59 = vld [vmem:[#allocation3 + $0x48] sm:$0xff] }
 0x5ec   :  { %791 = vrot.lane.b32.xlu0 %v738_v26, %s1457_s19 }
 0x5ed   :  { %v845_v61 = vld [vmem:[#allocation3 + $0x40] sm:$0xff] }
 0x5ee   :  { %789 = vrot.lane.b32.xlu1 %v737_v30, %s1457_s19 }
 0x5ef   :  { %v848_v55 = vld [vmem:[#allocation3 + $0x58] sm:$0xff] }
 0x5f0   :  { %771 = vrot.lane.b32.xlu0 %v740_v33, %s1461_s22 }
 0x5f1   :  { %v847_v57 = vld [vmem:[#allocation3 + $0x50] sm:$0xff] }
 0x5f2   :  { %769 = vrot.lane.b32.xlu1 %v739_v35, %s1461_s22 }
 0x5f4   :  { %767 = vrot.lane.b32.xlu0 %v738_v26, %s1461_s22 }
 0x5f6   :  { %765 = vrot.lane.b32.xlu1 %v737_v30, %s1461_s22 }
 0x5f8   :  { %751 = vrot.lane.b32.xlu0 %v740_v33, %s1459_s20 }
 0x5fa   :  { %749 = vrot.lane.b32.xlu1 %v739_v35, %s1459_s20 }
 0x5fc   :  { %747 = vrot.lane.b32.xlu0 %v738_v26, %s1459_s20 }
 0x5fe   :  { %745 = vrot.lane.b32.xlu1 %v737_v30, %s1459_s20 }
 0x600   :  { %815 = vrot.lane.b32.xlu0 %v740_v33, %s1460_s21 }
 0x602   :  { %813 = vrot.lane.b32.xlu1 %v739_v35, %s1460_s21 }
 0x604   :  { %811 = vrot.lane.b32.xlu0 %v738_v26, %s1460_s21 }
 0x606   :  { %809 = vrot.lane.b32.xlu1 %v737_v30, %s1460_s21 }
 0x608   :  { %878 = vperm.xlu0 %1430, %v860_v36  }
 0x60a   :  { %873 = vperm.xlu1 %1431, %v859_v37  }
 0x60c   :  { %868 = vperm.xlu0 %1430, %v858_v38  }
 0x60e   :  { %863 = vperm.xlu1 %1431, %v857_v41  }
 0x65a   :  { %v796_v42 = vpop.permute.xlu0 %795 }
 0x65b   :  { %804 = vst.msk [vmem:[#allocation3 + $0x78] sm:$0xff] %vm112_vm4, %v796_v42 }
 0x65c   :  { %808 = vst.msk [vmem:[#allocation3 + $0x78] sm:$0xff] %vm114_vm6, %v1455_v2  ;;  %v794_v43 = vpop.permute.xlu1 %793 }
 0x65d   :  { %803 = vst.msk [vmem:[#allocation3 + $0x70] sm:$0xff] %vm112_vm4, %v794_v43 }
 0x65e   :  { %807 = vst.msk [vmem:[#allocation3 + $0x70] sm:$0xff] %vm114_vm6, %v1455_v2  ;;  %v792_v44 = vpop.permute.xlu0 %791 }
 0x65f   :  { %802 = vst.msk [vmem:[#allocation3 + $0x68] sm:$0xff] %vm112_vm4, %v792_v44 }
 0x660   :  { %806 = vst.msk [vmem:[#allocation3 + $0x68] sm:$0xff] %vm114_vm6, %v1455_v2  ;;  %v790_v45 = vpop.permute.xlu1 %789 }
 0x661   :  { %801 = vst.msk [vmem:[#allocation3 + $0x60] sm:$0xff] %vm112_vm4, %v790_v45 }
 0x662   :  { %805 = vst.msk [vmem:[#allocation3 + $0x60] sm:$0xff] %vm114_vm6, %v1455_v2  ;;  %v772_v46 = vpop.permute.xlu0 %771 }
 0x663   :  { %780 = vst.msk [vmem:[#allocation3 + $0x38] sm:$0xff] %vm104_vm12, %v772_v46  ;;  %v852_v47 = vld [vmem:[#allocation3 + $0x78] sm:$0xff] }
 0x664   :  { %784 = vst.msk [vmem:[#allocation3 + $0x38] sm:$0xff] %vm106_vm13, %v1455_v2  ;;  %895 = vmatpush1.msra.mxu1 %v852_v47  ;;  %v770_v48 = vpop.permute.xlu1 %769 }
 0x665   :  { %779 = vst.msk [vmem:[#allocation3 + $0x30] sm:$0xff] %vm104_vm12, %v770_v48  ;;  %896 = vmatprep.subr.mxu1 %v1455_v2  ;;  %v851_v49 = vld [vmem:[#allocation3 + $0x70] sm:$0xff] }
 0x666   :  { %783 = vst.msk [vmem:[#allocation3 + $0x30] sm:$0xff] %vm106_vm13, %v1455_v2  ;;  %v768_v50 = vpop.permute.xlu0 %767  ;;  %897 = vmatpush1.msra.mxu1 %v851_v49 }
 0x667   :  { %778 = vst.msk [vmem:[#allocation3 + $0x28] sm:$0xff] %vm104_vm12, %v768_v50  ;;  %898 = vmatprep.subr.mxu1 %v1455_v2  ;;  %v850_v51 = vld [vmem:[#allocation3 + $0x68] sm:$0xff] }
 0x668   :  { %782 = vst.msk [vmem:[#allocation3 + $0x28] sm:$0xff] %vm106_vm13, %v1455_v2  ;;  %899 = vmatpush1.msra.mxu1 %v850_v51  ;;  %v766_v52 = vpop.permute.xlu1 %765  ;;  %v1116_v51 = vld [vmem:[%s2106_s6 + $0x8] sm:$0xff] }
 0x669   :  { %777 = vst.msk [vmem:[#allocation3 + $0x20] sm:$0xff] %vm104_vm12, %v766_v52  ;;  %900 = vmatprep.subr.mxu1 %v1455_v2  ;;  %v849_v53 = vld [vmem:[#allocation3 + $0x60] sm:$0xff]  ;;  %v1145_v52 = vld [vmem:[%s2112_s12] sm:$0xff] }
 0x66a   :  { %781 = vst.msk [vmem:[#allocation3 + $0x20] sm:$0xff] %vm106_vm13, %v1455_v2  ;;  %v752_v54 = vpop.permute.xlu0 %751  ;;  %901 = vmatpush1.msra.mxu1 %v849_v53 }
 0x66b   :  { %760 = vst.msk [vmem:[#allocation3 + $0x18] sm:$0xff] %vm97_vm8, %v752_v54  ;;  %902 = vmatprep.subr.mxu1 %v1455_v2  ;;  %v844_v62 = vld [vmem:[#allocation3 + $0x38] sm:$0xff] }
 0x66c   :  { %764 = vst.msk [vmem:[#allocation3 + $0x18] sm:$0xff] %vm99_vm10, %v1455_v2  ;;  %903 = vmatpush1.msra.mxu1 %v848_v55  ;;  %v750_v56 = vpop.permute.xlu1 %749 }
 0x66d   :  { %759 = vst.msk [vmem:[#allocation3 + $0x10] sm:$0xff] %vm97_vm8, %v750_v56  ;;  %904 = vmatprep.subr.mxu1 %v1455_v2  ;;  %v843_v0 = vld [vmem:[#allocation3 + $0x30] sm:$0xff] }
 0x66e   :  { %763 = vst.msk [vmem:[#allocation3 + $0x10] sm:$0xff] %vm99_vm10, %v1455_v2  ;;  %v748_v58 = vpop.permute.xlu0 %747  ;;  %905 = vmatpush1.msra.mxu1 %v847_v57 }
 0x66f   :  { %758 = vst.msk [vmem:[#allocation3 + $0x8] sm:$0xff] %vm97_vm8, %v748_v58  ;;  %906 = vmatprep.subr.mxu1 %v1455_v2  ;;  %v842_v4 = vld [vmem:[#allocation3 + $0x28] sm:$0xff] }
 0x670   :  { %762 = vst.msk [vmem:[#allocation3 + $0x8] sm:$0xff] %vm99_vm10, %v1455_v2  ;;  %907 = vmatpush1.msra.mxu1 %v846_v59  ;;  %v746_v60 = vpop.permute.xlu1 %745 }
 0x671   :  { %757 = vst.msk [vmem:[#allocation3] sm:$0xff] %vm97_vm8, %v746_v60  ;;  %908 = vmatprep.subr.mxu1 %v1455_v2  ;;  %v841_v6 = vld [vmem:[#allocation3 + $0x20] sm:$0xff] }
 0x672   :  { %761 = vst.msk [vmem:[#allocation3] sm:$0xff] %vm99_vm10, %v1455_v2  ;;  %v816_v63 = vpop.permute.xlu0 %815  ;;  %909 = vmatpush1.msra.mxu1 %v845_v61 }
 0x673   :  { %824 = vst.msk [vmem:[#allocation3 + $0x98] sm:$0xff] %vm119_vm9, %v816_v63  ;;  %910 = vmatprep.subr.mxu1 %v1455_v2  ;;  %v840_v8 = vld [vmem:[#allocation3 + $0x18] sm:$0xff] }
 0x674   :  { %828 = vst.msk [vmem:[#allocation3 + $0x98] sm:$0xff] %vm121_vm11, %v1455_v2  ;;  %v814_v3 = vpop.permute.xlu1 %813  ;;  %911 = vmatpush1.msra.mxu1 %v844_v62 }
 0x675   :  { %823 = vst.msk [vmem:[#allocation3 + $0x90] sm:$0xff] %vm119_vm9, %v814_v3  ;;  %912 = vmatprep.subr.mxu1 %v1455_v2  ;;  %v839_v9 = vld [vmem:[#allocation3 + $0x10] sm:$0xff] }
 0x676   :  { %827 = vst.msk [vmem:[#allocation3 + $0x90] sm:$0xff] %vm121_vm11, %v1455_v2  ;;  %v812_v5 = vpop.permute.xlu0 %811  ;;  %913 = vmatpush1.msra.mxu1 %v843_v0 }
 0x677   :  { %822 = vst.msk [vmem:[#allocation3 + $0x88] sm:$0xff] %vm119_vm9, %v812_v5  ;;  %914 = vmatprep.subr.mxu1 %v1455_v2  ;;  %v838_v10 = vld [vmem:[#allocation3 + $0x8] sm:$0xff] }
 0x678   :  { %826 = vst.msk [vmem:[#allocation3 + $0x88] sm:$0xff] %vm121_vm11, %v1455_v2  ;;  %v810_v7 = vpop.permute.xlu1 %809  ;;  %915 = vmatpush1.msra.mxu1 %v842_v4 }
 0x679   :  { %821 = vst.msk [vmem:[#allocation3 + $0x80] sm:$0xff] %vm119_vm9, %v810_v7  ;;  %916 = vmatprep.subr.mxu1 %v1455_v2  ;;  %v837_v11 = vld [vmem:[#allocation3] sm:$0xff] }
 0x67a   :  { %825 = vst.msk [vmem:[#allocation3 + $0x80] sm:$0xff] %vm121_vm11, %v1455_v2  ;;  %917 = vmatpush1.msra.mxu1 %v841_v6 }
 0x67b   :  { %918 = vmatprep.subr.mxu1 %v1455_v2  ;;  %v856_v12 = vld [vmem:[#allocation3 + $0x98] sm:$0xff] }
 0x67c   :  { %919 = vmatpush1.msra.mxu1 %v840_v8 }
 0x67d   :  { %920 = vmatprep.subr.mxu1 %v1455_v2  ;;  %v855_v13 = vld [vmem:[#allocation3 + $0x90] sm:$0xff] }
 0x67e   :  { %921 = vmatpush1.msra.mxu1 %v839_v9 }
 0x67f   :  { %922 = vmatprep.subr.mxu1 %v1455_v2  ;;  %v854_v14 = vld [vmem:[#allocation3 + $0x88] sm:$0xff] }
 0x680   :  { %923 = vmatpush1.msra.mxu1 %v838_v10 }
 0x681   :  { %924 = vmatprep.subr.mxu1 %v1455_v2  ;;  %v853_v15 = vld [vmem:[#allocation3 + $0x80] sm:$0xff] }
 0x682   :  { %925 = vmatpush1.msra.mxu1 %v837_v11 }
 0x683   :  { %950 = vmatprep.subr.mxu1 %v1455_v2  ;;  %v879_v24 = vpop.permute.xlu0 %878 }
 0x684   :  { %951 = vmatpush2.msra.mxu1 %v856_v12 }
 0x685   :  { %952 = vmatprep.subr.mxu1 %v1455_v2  ;;  %v874_v23 = vpop.permute.xlu1 %873 }
 0x686   :  { %953 = vmatpush2.msra.mxu1 %v855_v13 }
 0x687   :  { %954 = vmatprep.subr.mxu1 %v1455_v2  ;;  %v869_v30 = vpop.permute.xlu0 %868 }
 0x688   :  { %955 = vmatpush2.msra.mxu1 %v854_v14 }
 0x689   :  { %956 = vmatprep.subr.mxu1 %v1455_v2  ;;  %v864_v25 = vpop.permute.xlu1 %863 }
 0x68a   :  { %957 = vmatpush2.msra.mxu1 %v853_v15 }
 0x68b   :  { %959 = vmatmul.mubr.f32.vlgmr.msra.gmra.mxu1 %v829_v16 }
 0x68c   :  { %1270 = vmatprep.mubr.msk.f32.mxu1 %vm881_vm15, %v832_v17 }
 0x68f   :  { %964 = vmatmul.mubr.f32.gmra.mxu1 %v831_v18 }
 0x690   :  { %1271 = vmatprep.mubr.msk.f32.mxu1 %vm881_vm15, %v834_v19 }
 0x693   :  { %969 = vmatmul.mubr.f32.gmra.mxu1 %v833_v20 }
 0x694   :  { %1272 = vmatprep.mubr.msk.f32.mxu1 %vm881_vm15, %v836_v21  ;;  %vm2131_vm15 = vmmov %vm2129_vm3 }
 0x697   :  { %974 = vmatmul.mubr.f32.gmra.mxu1 %v835_v22 }
 0x74b   :  { %v960_v26 = vpop.f32.mrf.mxu1 }
 0x74c   :  { %v961_v27 = vadd.f32 %v960_v26, %v864_v25 }
 0x74d   :  { %v962_v28 = vpop.f32.mrf.mxu1 }
 0x74e   :  { %v979_v29 = vmax.f32 %v961_v27, 0.0 }
 0x74f   :  { %v965_v31 = vpop.f32.mrf.mxu1 }
 0x750   :  { %v983_v32 = vsel %vm1618_vm14, %v979_v29, 0.0  ;;  %v966_v33 = vadd.f32 %v965_v31, %v869_v30 }
 0x751   :  { %1051 = vst.msk [vmem:[#allocation3 + $0x60] sm:$0xff] %vm68_vm0, %v983_v32  ;;  %v967_v34 = vpop.f32.mrf.mxu1 }
 0x752   :  { %v980_v35 = vmax.f32 %v966_v33, 0.0 }
 0x753   :  { %v970_v36 = vpop.f32.mrf.mxu1 }
 0x754   :  { %v984_v37 = vsel %vm1618_vm14, %v980_v35, 0.0  ;;  %v971_v38 = vadd.f32 %v970_v36, %v874_v23 }
 0x755   :  { %1052 = vst.msk [vmem:[#allocation3 + $0x68] sm:$0xff] %vm68_vm0, %v984_v37  ;;  %v972_v40 = vpop.f32.mrf.mxu1 }
 0x756   :  { %v981_v41 = vmax.f32 %v971_v38, 0.0  ;;  %v1115_v40 = vld [vmem:[%s2106_s6] sm:$0xff]  ;;  %s1432_s6 = scalar_lea.vmem %s1242_s23, 128 }
 0x757   :  { %v975_v42 = vpop.f32.mrf.mxu1  ;;  %p1433_p0 = scmp.ne.s32.totalorder %s1242_s23, %s1432_s6  ;;  %p1438_p2 = scmp.lt.s32.totalorder %s1432_s6, %s1432_s6 }
 0x758   :  { %v985_v43 = vsel %vm1618_vm14, %v981_v41, 0.0  ;;  %v976_v44 = vadd.f32 %v975_v42, %v879_v24  ;;  %v1129_v50 = vld [vmem:[#allocation3 + $0x60] sm:$0xff] }
 0x759   :  { %1053 = vst.msk [vmem:[#allocation3 + $0x70] sm:$0xff] %vm68_vm0, %v985_v43  ;;  %v977_v45 = vpop.f32.mrf.mxu1  ;;  %1035 = vrot.lane.b32.xlu1 %v985_v43, %s1461_s22  ;;  %p1439_p3 = por %p1438_p2, %p1437_p1 }
 0x75a   :  { %v982_v46 = vmax.f32 %v976_v44, 0.0 }
 0x75b   :  { %p1440_p4 = pnand %p1439_p3, %p1433_p0 }
 0x75c   :  { %v986_v47 = vsel %vm1618_vm14, %v982_v46, 0.0  ;;  %v1130_v49 = vld [vmem:[#allocation3 + $0x68] sm:$0xff] }
 0x75d   :  { %1054 = vst.msk [vmem:[#allocation3 + $0x78] sm:$0xff] %vm68_vm0, %v986_v47  ;;  %1037 = vrot.lane.b32.xlu0 %v986_v47, %s1461_s22  ;;  %1031 = vrot.lane.b32.xlu1 %v983_v32, %s1461_s22  ;;  %vm1151_vm0 = vcmask 785408  }
 0x75e   :  { %1273 = vmatprep.mubr.msk.f32.mxu0 %vm1151_vm0, %v1116_v51  ;;  %vm2132_vm0 = vmmov %vm2130_vm7 }
 0x760   :  { %v1131_v39 = vld [vmem:[#allocation3 + $0x70] sm:$0xff] }
 0x761   :  { %1033 = vrot.lane.b32.xlu0 %v984_v37, %s1461_s22  ;;  %1015 = vrot.lane.b32.xlu1 %v985_v43, %s1459_s20 }
 0x764   :  { %v1132_v48 = vld [vmem:[#allocation3 + $0x78] sm:$0xff] }
 0x765   :  { %1156 = vmatpush1.msra.mxu0 %v1132_v48  ;;  %1017 = vrot.lane.b32.xlu0 %v986_v47, %s1459_s20 }
 0x766   :  { %1011 = vrot.lane.b32.xlu1 %v983_v32, %s1459_s20  ;;  %1157 = vmatprep.subr.mxu0 %v1455_v2 }
 0x767   :  { %1158 = vmatpush1.msra.mxu0 %v1131_v39 }
 0x768   :  { %1159 = vmatprep.subr.mxu0 %v1455_v2 }
 0x769   :  { %1013 = vrot.lane.b32.xlu0 %v984_v37, %s1459_s20  ;;  %1160 = vmatpush1.msra.mxu0 %v1130_v49 }
 0x76a   :  { %995 = vrot.lane.b32.xlu1 %v985_v43, %s1454_s15  ;;  %1161 = vmatprep.subr.mxu0 %v1455_v2 }
 0x76b   :  { %1162 = vmatpush1.msra.mxu0 %v1129_v50 }
 0x76c   :  { %1163 = vmatprep.subr.mxu0 %v1455_v2 }
 0x76d   :  { %997 = vrot.lane.b32.xlu0 %v986_v47, %s1454_s15 }
 0x76e   :  { %991 = vrot.lane.b32.xlu1 %v983_v32, %s1454_s15 }
 0x771   :  { %993 = vrot.lane.b32.xlu0 %v984_v37, %s1454_s15 }
 0x772   :  { %1099 = vrot.lane.b32.xlu1 %v985_v43, %s1458_s0 }
 0x775   :  { %1101 = vrot.lane.b32.xlu0 %v986_v47, %s1458_s0 }
 0x776   :  { %1095 = vrot.lane.b32.xlu1 %v983_v32, %s1458_s0 }
 0x779   :  { %1097 = vrot.lane.b32.xlu0 %v984_v37, %s1458_s0 }
 0x77a   :  { %1079 = vrot.lane.b32.xlu1 %v985_v43, %s1460_s21 }
 0x77d   :  { %1081 = vrot.lane.b32.xlu0 %v986_v47, %s1460_s21 }
 0x77e   :  { %1075 = vrot.lane.b32.xlu1 %v983_v32, %s1460_s21 }
 0x781   :  { %1077 = vrot.lane.b32.xlu0 %v984_v37, %s1460_s21  ;;  %s1464_s21 = smov 103  }
 0x782   :  { %1059 = vrot.lane.b32.xlu1 %v985_v43, %s1457_s19 }
 0x785   :  { %1061 = vrot.lane.b32.xlu0 %v986_v47, %s1457_s19 }
 0x786   :  { %1055 = vrot.lane.b32.xlu1 %v983_v32, %s1457_s19 }
 0x789   :  { %1057 = vrot.lane.b32.xlu0 %v984_v37, %s1457_s19 }
 0x78d   :  { %1148 = vperm.xlu0 %1430, %v1145_v52  }
 0x7cb   :  { %v1036_v53 = vpop.permute.xlu1 %1035 }
 0x7cc   :  { %1045 = vst.msk [vmem:[#allocation3 + $0x50] sm:$0xff] %vm104_vm12, %v1036_v53 }
 0x7cd   :  { %1049 = vst.msk [vmem:[#allocation3 + $0x50] sm:$0xff] %vm106_vm13, %v1455_v2 }
 0x7cf   :  { %v1038_v54 = vpop.permute.xlu0 %1037  ;;  %v1032_v55 = vpop.permute.xlu1 %1031 }
 0x7d0   :  { %1046 = vst.msk [vmem:[#allocation3 + $0x58] sm:$0xff] %vm104_vm12, %v1038_v54  ;;  %1043 = vst.msk [vmem:[#allocation3 + $0x40] sm:$0xff] %vm104_vm12, %v1032_v55 }
 0x7d1   :  { %1050 = vst.msk [vmem:[#allocation3 + $0x58] sm:$0xff] %vm106_vm13, %v1455_v2  ;;  %1047 = vst.msk [vmem:[#allocation3 + $0x40] sm:$0xff] %vm106_vm13, %v1455_v2 }
 0x7d3   :  { %v1034_v56 = vpop.permute.xlu0 %1033  ;;  %v1016_v57 = vpop.permute.xlu1 %1015 }
 0x7d4   :  { %1044 = vst.msk [vmem:[#allocation3 + $0x48] sm:$0xff] %vm104_vm12, %v1034_v56  ;;  %v1127_v61 = vld [vmem:[#allocation3 + $0x50] sm:$0xff]  ;;  %vm2121_vm12 = vcmask 359448  }
 0x7d5   :  { %1025 = vst.msk [vmem:[#allocation3 + $0x30] sm:$0xff] %vm97_vm8, %v1016_v57  ;;  %vm2123_vm14 = vmmov %vm2121_vm12 }
 0x7d6   :  { %1048 = vst.msk [vmem:[#allocation3 + $0x48] sm:$0xff] %vm106_vm13, %v1455_v2  ;;  %vm2122_vm13 = vcmask 23552  }
 0x7d7   :  { %1029 = vst.msk [vmem:[#allocation3 + $0x30] sm:$0xff] %vm99_vm10, %v1455_v2  ;;  %v1018_v58 = vpop.permute.xlu0 %1017 }
 0x7d8   :  { %1026 = vst.msk [vmem:[#allocation3 + $0x38] sm:$0xff] %vm97_vm8, %v1018_v58  ;;  %v1012_v59 = vpop.permute.xlu1 %1011  ;;  %v1128_v60 = vld [vmem:[#allocation3 + $0x58] sm:$0xff]  ;;  %v1125_v3 = vld [vmem:[#allocation3 + $0x40] sm:$0xff] }
 0x7d9   :  { %1030 = vst.msk [vmem:[#allocation3 + $0x38] sm:$0xff] %vm99_vm10, %v1455_v2  ;;  %1164 = vmatpush1.msra.mxu0 %v1128_v60 }
 0x7da   :  { %1023 = vst.msk [vmem:[#allocation3 + $0x20] sm:$0xff] %vm97_vm8, %v1012_v59  ;;  %1165 = vmatprep.subr.mxu0 %v1455_v2 }
 0x7db   :  { %1027 = vst.msk [vmem:[#allocation3 + $0x20] sm:$0xff] %vm99_vm10, %v1455_v2  ;;  %v1014_v62 = vpop.permute.xlu0 %1013  ;;  %1166 = vmatpush1.msra.mxu0 %v1127_v61 }
 0x7dc   :  { %1024 = vst.msk [vmem:[#allocation3 + $0x28] sm:$0xff] %vm97_vm8, %v1014_v62  ;;  %v996_v63 = vpop.permute.xlu1 %995  ;;  %1167 = vmatprep.subr.mxu0 %v1455_v2  ;;  %vm2124_vm8 = vmmov %vm2122_vm13 }
 0x7dd   :  { %v1126_v0 = vld [vmem:[#allocation3 + $0x48] sm:$0xff]  ;;  %1028 = vst.msk [vmem:[#allocation3 + $0x28] sm:$0xff] %vm99_vm10, %v1455_v2  ;;  %vm2125_vm10 = vmmov %vm2121_vm12 }
 0x7de   :  { %1005 = vst.msk [vmem:[#allocation3 + $0x10] sm:$0xff] %vm2121_vm12, %v996_v63  ;;  %1168 = vmatpush1.msra.mxu0 %v1126_v0  ;;  %v1123_v7 = vld [vmem:[#allocation3 + $0x30] sm:$0xff]  ;;  %vm2126_vm2 = vmmov %vm2124_vm8 }
 0x7df   :  { %1009 = vst.msk [vmem:[#allocation3 + $0x10] sm:$0xff] %vm2122_vm13, %v1455_v2  ;;  %1169 = vmatprep.subr.mxu0 %v1455_v2  ;;  %v998_v4 = vpop.permute.xlu0 %997  ;;  %vm2127_vm1 = vmmov %vm2125_vm10 }
 0x7e0   :  { %1170 = vmatpush1.msra.mxu0 %v1125_v3  ;;  %1006 = vst.msk [vmem:[#allocation3 + $0x18] sm:$0xff] %vm2123_vm14, %v998_v4  ;;  %v992_v5 = vpop.permute.xlu1 %991  ;;  %v1124_v6 = vld [vmem:[#allocation3 + $0x38] sm:$0xff]  ;;  %vm2128_vm5 = vmmov %vm2126_vm2 }
 0x7e1   :  { %1171 = vmatprep.subr.mxu0 %v1455_v2  ;;  %1010 = vst.msk [vmem:[#allocation3 + $0x18] sm:$0xff] %vm2124_vm8, %v1455_v2  ;;  %vm2133_vm12 = vmmov %vm2129_vm3 }
 0x7e2   :  { %1003 = vst.msk [vmem:[#allocation3] sm:$0xff] %vm2125_vm10, %v992_v5  ;;  %1172 = vmatpush1.msra.mxu0 %v1124_v6  ;;  %v1121_v11 = vld [vmem:[#allocation3 + $0x20] sm:$0xff]  ;;  %vm2134_vm13 = vmmov %vm2132_vm0 }
 0x7e3   :  { %1007 = vst.msk [vmem:[#allocation3] sm:$0xff] %vm2126_vm2, %v1455_v2  ;;  %1173 = vmatprep.subr.mxu0 %v1455_v2  ;;  %v994_v8 = vpop.permute.xlu0 %993  ;;  %vm2135_vm14 = vmmov %vm2129_vm3 }
 0x7e4   :  { %1174 = vmatpush1.msra.mxu0 %v1123_v7  ;;  %1004 = vst.msk [vmem:[#allocation3 + $0x8] sm:$0xff] %vm2127_vm1, %v994_v8  ;;  %v1100_v9 = vpop.permute.xlu1 %1099  ;;  %v1122_v10 = vld [vmem:[#allocation3 + $0x28] sm:$0xff]  ;;  %vm2136_vm8 = vmmov %vm2132_vm0 }
 0x7e5   :  { %1175 = vmatprep.subr.mxu0 %v1455_v2  ;;  %1008 = vst.msk [vmem:[#allocation3 + $0x8] sm:$0xff] %vm2128_vm5, %v1455_v2 }
 0x7e6   :  { %1109 = vst.msk [vmem:[#allocation3 + $0xd0] sm:$0xff] %vm2129_vm3, %v1100_v9  ;;  %1176 = vmatpush1.msra.mxu0 %v1122_v10  ;;  %v1119_v15 = vld [vmem:[#allocation3 + $0x10] sm:$0xff] }
 0x7e7   :  { %1113 = vst.msk [vmem:[#allocation3 + $0xd0] sm:$0xff] %vm2130_vm7, %v1455_v2  ;;  %1177 = vmatprep.subr.mxu0 %v1455_v2  ;;  %v1102_v12 = vpop.permute.xlu0 %1101 }
 0x7e8   :  { %1178 = vmatpush1.msra.mxu0 %v1121_v11  ;;  %1110 = vst.msk [vmem:[#allocation3 + $0xd8] sm:$0xff] %vm2131_vm15, %v1102_v12  ;;  %v1096_v13 = vpop.permute.xlu1 %1095  ;;  %v1120_v14 = vld [vmem:[#allocation3 + $0x18] sm:$0xff] }
 0x7e9   :  { %1179 = vmatprep.subr.mxu0 %v1455_v2  ;;  %1114 = vst.msk [vmem:[#allocation3 + $0xd8] sm:$0xff] %vm2132_vm0, %v1455_v2 }
 0x7ea   :  { %1107 = vst.msk [vmem:[#allocation3 + $0xc0] sm:$0xff] %vm2133_vm12, %v1096_v13  ;;  %1180 = vmatpush1.msra.mxu0 %v1120_v14  ;;  %v1117_v19 = vld [vmem:[#allocation3] sm:$0xff] }
 0x7eb   :  { %1111 = vst.msk [vmem:[#allocation3 + $0xc0] sm:$0xff] %vm2134_vm13, %v1455_v2  ;;  %1181 = vmatprep.subr.mxu0 %v1455_v2  ;;  %v1098_v16 = vpop.permute.xlu0 %1097 }
 0x7ec   :  { %1182 = vmatpush1.msra.mxu0 %v1119_v15  ;;  %1108 = vst.msk [vmem:[#allocation3 + $0xc8] sm:$0xff] %vm2135_vm14, %v1098_v16  ;;  %v1080_v17 = vpop.permute.xlu1 %1079  ;;  %v1118_v18 = vld [vmem:[#allocation3 + $0x8] sm:$0xff] }
 0x7ed   :  { %1183 = vmatprep.subr.mxu0 %v1455_v2  ;;  %1112 = vst.msk [vmem:[#allocation3 + $0xc8] sm:$0xff] %vm2136_vm8, %v1455_v2 }
 0x7ee   :  { %1089 = vst.msk [vmem:[#allocation3 + $0xb0] sm:$0xff] %vm119_vm9, %v1080_v17  ;;  %1184 = vmatpush1.msra.mxu0 %v1118_v18  ;;  %v1143_v23 = vld [vmem:[#allocation3 + $0xd0] sm:$0xff] }
 0x7ef   :  { %1093 = vst.msk [vmem:[#allocation3 + $0xb0] sm:$0xff] %vm121_vm11, %v1455_v2  ;;  %1185 = vmatprep.subr.mxu0 %v1455_v2  ;;  %v1082_v20 = vpop.permute.xlu0 %1081 }
 0x7f0   :  { %1186 = vmatpush1.msra.mxu0 %v1117_v19  ;;  %1090 = vst.msk [vmem:[#allocation3 + $0xb8] sm:$0xff] %vm119_vm9, %v1082_v20  ;;  %v1076_v21 = vpop.permute.xlu1 %1075  ;;  %v1144_v22 = vld [vmem:[#allocation3 + $0xd8] sm:$0xff] }
 0x7f1   :  { %1195 = vmatprep.subr.mxu0 %v1455_v2  ;;  %1094 = vst.msk [vmem:[#allocation3 + $0xb8] sm:$0xff] %vm121_vm11, %v1455_v2 }
 0x7f2   :  { %1087 = vst.msk [vmem:[#allocation3 + $0xa0] sm:$0xff] %vm119_vm9, %v1076_v21  ;;  %1196 = vmatpush2.msra.mxu0 %v1144_v22  ;;  %v1141_v27 = vld [vmem:[#allocation3 + $0xc0] sm:$0xff] }
 0x7f3   :  { %1091 = vst.msk [vmem:[#allocation3 + $0xa0] sm:$0xff] %vm121_vm11, %v1455_v2  ;;  %1197 = vmatprep.subr.mxu0 %v1455_v2  ;;  %v1078_v24 = vpop.permute.xlu0 %1077 }
 0x7f4   :  { %1198 = vmatpush2.msra.mxu0 %v1143_v23  ;;  %1088 = vst.msk [vmem:[#allocation3 + $0xa8] sm:$0xff] %vm119_vm9, %v1078_v24  ;;  %v1060_v25 = vpop.permute.xlu1 %1059  ;;  %v1142_v26 = vld [vmem:[#allocation3 + $0xc8] sm:$0xff] }
 0x7f5   :  { %1199 = vmatprep.subr.mxu0 %v1455_v2  ;;  %1092 = vst.msk [vmem:[#allocation3 + $0xa8] sm:$0xff] %vm121_vm11, %v1455_v2 }
 0x7f6   :  { %1069 = vst.msk [vmem:[#allocation3 + $0x90] sm:$0xff] %vm112_vm4, %v1060_v25  ;;  %1200 = vmatpush2.msra.mxu0 %v1142_v26  ;;  %v1139_v31 = vld [vmem:[#allocation3 + $0xb0] sm:$0xff] }
 0x7f7   :  { %1073 = vst.msk [vmem:[#allocation3 + $0x90] sm:$0xff] %vm114_vm6, %v1455_v2  ;;  %1201 = vmatprep.subr.mxu0 %v1455_v2  ;;  %v1062_v28 = vpop.permute.xlu0 %1061 }
 0x7f8   :  { %1202 = vmatpush2.msra.mxu0 %v1141_v27  ;;  %1070 = vst.msk [vmem:[#allocation3 + $0x98] sm:$0xff] %vm112_vm4, %v1062_v28  ;;  %v1056_v29 = vpop.permute.xlu1 %1055  ;;  %v1140_v30 = vld [vmem:[#allocation3 + $0xb8] sm:$0xff] }
 0x7f9   :  { %1203 = vmatprep.subr.mxu0 %v1455_v2  ;;  %1074 = vst.msk [vmem:[#allocation3 + $0x98] sm:$0xff] %vm114_vm6, %v1455_v2 }
 0x7fa   :  { %1067 = vst.msk [vmem:[#allocation3 + $0x80] sm:$0xff] %vm112_vm4, %v1056_v29  ;;  %1204 = vmatpush2.msra.mxu0 %v1140_v30  ;;  %v1137_v34 = vld [vmem:[#allocation3 + $0xa0] sm:$0xff] }
 0x7fb   :  { %1071 = vst.msk [vmem:[#allocation3 + $0x80] sm:$0xff] %vm114_vm6, %v1455_v2  ;;  %1205 = vmatprep.subr.mxu0 %v1455_v2  ;;  %v1058_v32 = vpop.permute.xlu0 %1057 }
 0x7fc   :  { %1206 = vmatpush2.msra.mxu0 %v1139_v31  ;;  %1068 = vst.msk [vmem:[#allocation3 + $0x88] sm:$0xff] %vm112_vm4, %v1058_v32  ;;  %v1138_v33 = vld [vmem:[#allocation3 + $0xa8] sm:$0xff]  ;;  %vm1229_vm4 = vcmask 125952  }
 0x7fd   :  { %1207 = vmatprep.subr.mxu0 %v1455_v2  ;;  %1072 = vst.msk [vmem:[#allocation3 + $0x88] sm:$0xff] %vm114_vm6, %v1455_v2  ;;  %vm586_vm6 = vcmask 124928  }
 0x7fe   :  { %1208 = vmatpush2.msra.mxu0 %v1138_v33  ;;  %v1135_v36 = vld [vmem:[#allocation3 + $0x90] sm:$0xff] }
 0x7ff   :  { %1209 = vmatprep.subr.mxu0 %v1455_v2 }
 0x800   :  { %1210 = vmatpush2.msra.mxu0 %v1137_v34  ;;  %v1136_v35 = vld [vmem:[#allocation3 + $0x98] sm:$0xff] }
 0x801   :  { %1211 = vmatprep.subr.mxu0 %v1455_v2 }
 0x802   :  { %1212 = vmatpush2.msra.mxu0 %v1136_v35  ;;  %v1133_v38 = vld [vmem:[#allocation3 + $0x80] sm:$0xff] }
 0x803   :  { %1213 = vmatprep.subr.mxu0 %v1455_v2 }
 0x804   :  { %1214 = vmatpush2.msra.mxu0 %v1135_v36  ;;  %v1134_v37 = vld [vmem:[#allocation3 + $0x88] sm:$0xff] }
 0x805   :  { %1215 = vmatprep.subr.mxu0 %v1455_v2 }
 0x806   :  { %1216 = vmatpush2.msra.mxu0 %v1134_v37 }
 0x807   :  { %1217 = vmatprep.subr.mxu0 %v1455_v2 }
 0x808   :  { %1218 = vmatpush2.msra.mxu0 %v1133_v38  ;;  %v1149_v41 = vpop.permute.xlu0 %1148 }
 0x809   :  { %1220 = vmatmul.mubr.f32.vlgmr.msra.gmra.mxu0 %v1115_v40 }
 0x8c9   :  { %v1221_v42 = vpop.f32.mrf.mxu0 }
 0x8ca   :  { %v1222_v43 = vadd.f32 %v1221_v42, %v1149_v41 }
 0x8cb   :  { %v1223_v44 = vpop.f32.mrf.mxu0 }
 0x8cc   :  { %1231 = vrot.lane.b32.xlu0 %v1222_v43, %s1464_s21  ;;  %1226 = vrot.lane.b32.xlu1 %v1222_v43, %s1458_s0 }
 0x8d0   :  { %588 = vrot.lane.b32.xlu0 %v1765_v1, %s1464_s21  ;;  %583 = vrot.lane.b32.xlu1 %v1765_v1, %s1458_s0 }
 0x93e   :  { %v1232_v2 = vpop.permute.xlu0 %1231  ;;  %v1227_v45 = vpop.permute.xlu1 %1226 }
 0x93f   :  { %1235 = vst.msk [vmem:[#allocation4 + $0x4] sm:$0xf] %vm1229_vm4, %v1232_v2  ;;  %1230 = vst.msk [vmem:[#allocation4] sm:$0xf] %vm1229_vm4, %v1227_v45 }
 0x940   :  { %1443 = shalt.err (!%p1440_p4)
}
 0x941   :  { %s1466_s24 = smov 64   ;;  %s1467_s25 = smov 4  }
 0x942   :  { %1247 = dma.vmem_to_hbm [thread:$0]  %s1242_s23, 128, %s2113_s13, [#allocation5], %s1466_s24, %s1466_s24, %s1467_s25   ;;  %v589_v1 = vpop.permute.xlu0 %588  ;;  %v584_v46 = vpop.permute.xlu1 %583 }
 0x943   :  { %1264 = vst.msk [vmem:[%s2114_s14 + $0x4] sm:$0x7] %vm586_vm6, %v589_v1  ;;  %587 = vst.msk [vmem:[%s2114_s14] sm:$0x7] %vm586_vm6, %v584_v46 }
 0x944   :  { %1452 = dma.done.wait [#allocation5], 128  }
 0x945   :  { %1453 = vsyncadd [#allocation5], 4294967168 }
 0x946   :  { %1255 = vsyncpa [#allocation5], 1 }

</bundles_post_ra>
